<compile_context>
chip_gen: v5e
topology: v5e:2x2
jax: 0.10.0
libtpu: 0.0.40
codegen_flags: <defaults>
</compile_context>

<pallas_src>
import functools

import jax
import jax.numpy as jnp
from jax import lax
from jax.experimental import pallas as pl
from jax.experimental.pallas import tpu as pltpu

KS = 7      # kernel_size
PAD = 3     # padding for kernel_size=7


def spatial_attn_kernel(w_ref, b_ref, x_ref, o_ref, acc_ref, maps_ref, *, H, W):
    # w_ref:    SMEM (2*KS*KS,) conv weight, order [c, ky, kx]; ch-0 pre-scaled by 1/C
    # b_ref:    SMEM (1,) conv bias
    # x_ref:    VMEM (1, Ck, H, W) one channel tile of one batch element
    # o_ref:    VMEM (1, 1, H, W) output
    # acc_ref:  VMEM (2, H, W) running [channel-sum, channel-max]
    # maps_ref: VMEM (2, H+2*PAD, W+2*PAD) zero-padded conv input (used at finalize)
    c_step = pl.program_id(1)
    last = pl.num_programs(1) - 1
    Wp = W + 2 * PAD

    # Upcast once; keep reductions and all VPU math in f32.
    xb = x_ref[0].astype(jnp.float32)              # (Ck, H, W)
    part_sum = jnp.sum(xb, axis=0)                 # (H, W)
    part_max = jnp.max(xb, axis=0)                 # (H, W)

    @pl.when(c_step == 0)
    def _init():
        acc_ref[0] = part_sum
        acc_ref[1] = part_max

    @pl.when(c_step > 0)
    def _accumulate():
        acc_ref[0] = acc_ref[0] + part_sum
        acc_ref[1] = jnp.maximum(acc_ref[1], part_max)

    @pl.when(c_step == last)
    def _finalize():
        # Build the zero-padded 2-channel conv input.  The halo must be
        # re-zeroed every batch element: VMEM scratch persists across grid
        # iterations, so otherwise stale data would leak into the conv border.
        maps_ref[...] = jnp.zeros_like(maps_ref)
        maps_ref[0, PAD:PAD + H, PAD:PAD + W] = acc_ref[0]   # channel sum (1/C folded into w)
        maps_ref[1, PAD:PAD + H, PAD:PAD + W] = acc_ref[1]   # channel max

        # 7x7 conv + bias + sigmoid gating.  One row-band VMEM load per
        # (channel, ky) -- 14 loads total -- and the 7 kx shifts are static
        # lane slices on the already-loaded registers (XLU work, off the
        # VPU/load slots), instead of 98 unaligned ref slices.
        # NOTE: for very large H, strip-mine ky over 8-row output strips with
        # lax.fori_loop(..., unroll=True) to bound live vregs; unnecessary at
        # these sizes.
        conv = jnp.zeros((H, W), dtype=jnp.float32)
        for c in range(2):
            for ky in range(KS):
                band = maps_ref[c, ky:ky + H, :]             # (H, Wp) single load
                for kx in range(KS):
                    w = w_ref[c * KS * KS + ky * KS + kx]
                    conv = conv + w * band[:, kx:kx + W]
        conv = conv + b_ref[0]

        y = jax.nn.sigmoid(conv) * conv
        o_ref[0, 0] = y.astype(o_ref.dtype)


def spatial_attention(x, w, b, *, ck_max_bytes=8 * 1024 * 1024):
    """x: (N, C, H, W); w: (1, 2, KS, KS); b: (1,). Returns (N, 1, H, W)."""
    N, C, H, W = x.shape
    Hp, Wp = H + 2 * PAD, W + 2 * PAD

    # Fold the 1/C mean normalization into the channel-0 conv weights so the
    # kernel accumulates a plain channel sum (no per-pixel rescale pass).
    w_f32 = w.astype(jnp.float32)
    w_folded = w_f32.at[:, 0].multiply(1.0 / C)
    w_flat = w_folded.reshape(-1)                 # (2*KS*KS,), order [c, ky, kx]
    b_flat = b.reshape(-1).astype(jnp.float32)    # (1,)

    # Channel tile: largest divisor of C whose (1, Ck, H, W) block stays small
    # enough to double-buffer comfortably (bounds VMEM; required for v7x).
    itemsize = jnp.dtype(x.dtype).itemsize
    ck_cap = max(1, ck_max_bytes // max(1, H * W * itemsize))
    Ck = 1
    for d in range(1, C + 1):
        if C % d == 0 and d <= ck_cap:
            Ck = d
    n_csteps = C // Ck

    kernel = functools.partial(spatial_attn_kernel, H=H, W=W)
    out = pl.pallas_call(
        kernel,
        out_shape=jax.ShapeDtypeStruct((N, 1, H, W), x.dtype),
        grid=(N, n_csteps),
        in_specs=[
            pl.BlockSpec(memory_space=pltpu.MemorySpace.SMEM),   # conv weights
            pl.BlockSpec(memory_space=pltpu.MemorySpace.SMEM),   # conv bias
            pl.BlockSpec((1, Ck, H, W), lambda n, c: (n, c, 0, 0)),
        ],
        # NOTE: for production sizes choose W as a multiple of 128 so the
        # output store and per-tap VPU work are lane-dense.
        out_specs=pl.BlockSpec((1, 1, H, W), lambda n, c: (n, 0, 0, 0)),
        scratch_shapes=[
            pltpu.VMEM((2, H, W), jnp.float32),     # running [sum, max]
            pltpu.VMEM((2, Hp, Wp), jnp.float32),   # zero-padded conv input
        ],
        compiler_params=pltpu.CompilerParams(
            # Batch elements are independent -> "parallel" shards N across
            # v7x's 2 TensorCores (neutral on v5e/v6e).  Channel axis is a
            # reduction carried in scratch -> "arbitrary", iterated last.
            dimension_semantics=("parallel", "arbitrary"),
            vmem_limit_bytes=64 * 1024 * 1024,
        ),
    )(w_flat, b_flat, x)
    return out


def reference(x, w, b):
    avg = jnp.mean(x, axis=1, keepdims=True)
    mx = jnp.max(x, axis=1, keepdims=True)
    cat = jnp.concatenate([avg, mx], axis=1)
    conv = lax.conv_general_dilated(
        cat, w, window_strides=(1, 1),
        padding=[(PAD, PAD), (PAD, PAD)],
        dimension_numbers=("NCHW", "OIHW", "NCHW"),
    ) + b.reshape(1, 1, 1, 1)
    return jax.nn.sigmoid(conv) * conv


if __name__ == "__main__":
    key = jax.random.PRNGKey(0)
    kx, kw, kb = jax.random.split(key, 3)

    N, C, H, W = 2, 4, 16, 16
    x = jax.random.normal(kx, (N, C, H, W), dtype=jnp.float32)

    # Deterministic conv parameter init (PyTorch-style uniform(-1/sqrt(fan_in), ...)).
    fan_in = 2 * KS * KS
    bound = 1.0 / (fan_in ** 0.5)
    w = jax.random.uniform(kw, (1, 2, KS, KS), minval=-bound, maxval=bound,
                           dtype=jnp.float32)
    b = jax.random.uniform(kb, (1,), minval=-bound, maxval=bound,
                           dtype=jnp.float32)

    out = spatial_attention(x, w, b)
    jax.block_until_ready(out)

    ref = reference(x, w, b)
    assert out.shape == (N, 1, H, W)
    assert jnp.allclose(out, ref, atol=1e-5, rtol=1e-5), float(
        jnp.max(jnp.abs(out - ref)))

    print("KERNEL_OK")
</pallas_src>

<mosaic_0001>
module attributes {stable_mosaic.version = 11 : i64} {
  func.func @spatial_attn_kernel(%arg0: i32, %arg1: i32, %arg2: memref<98xf32, #tpu.memory_space<smem>>, %arg3: memref<1xf32, #tpu.memory_space<smem>>, %arg4: memref<1x4x16x16xf32, #tpu.memory_space<vmem>>, %arg5: memref<1x1x16x16xf32, #tpu.memory_space<vmem>>, %arg6: memref<2x16x16xf32, #tpu.memory_space<vmem>>, %arg7: memref<2x22x22xf32, #tpu.memory_space<vmem>>) attributes {dimension_semantics = [#tpu.dimension_semantics<parallel>, #tpu.dimension_semantics<arbitrary>], iteration_bounds = array<i64: 2, 1>, scalar_prefetch = 0 : i64, scratch_operands = 2 : i64, tpu.core_type = #tpu.core_type<tc>, window_params = [{transform_indices = @transform_0, window_bounds = array<i64: 98>}, {transform_indices = @transform_1, window_bounds = array<i64: 1>}, {transform_indices = @transform_2, window_bounds = array<i64: 1, 4, 16, 16>}, {transform_indices = @transform_3, window_bounds = array<i64: 1, 1, 16, 16>}]} {
    %c0 = arith.constant 0 : index
    %c0_0 = arith.constant 0 : index
    %c0_1 = arith.constant 0 : index
    %c0_2 = arith.constant 0 : index
    %0 = vector.load %arg4[%c0, %c0_0, %c0_1, %c0_2] : memref<1x4x16x16xf32, #tpu.memory_space<vmem>>, vector<1x4x16x16xf32>
    %1 = vector.shape_cast %0 : vector<1x4x16x16xf32> to vector<4x16x16xf32>
    %cst = arith.constant dense<0.000000e+00> : vector<16x16xf32>
    %2 = vector.multi_reduction <add>, %1, %cst [0] : vector<4x16x16xf32> to vector<16x16xf32>
    %cst_3 = arith.constant dense<0xFF800000> : vector<16x16xf32>
    %3 = vector.multi_reduction <maximumf>, %1, %cst_3 [0] : vector<4x16x16xf32> to vector<16x16xf32>
    %c0_i32 = arith.constant 0 : i32
    %4 = arith.cmpi eq, %arg1, %c0_i32 : i32
    %5 = arith.extui %4 : i1 to i32
    %c0_i32_4 = arith.constant 0 : i32
    %6 = arith.cmpi ne, %5, %c0_i32_4 : i32
    scf.if %6 {
      %c0_9 = arith.constant 0 : index
      %c0_10 = arith.constant 0 : index
      %c0_11 = arith.constant 0 : index
      %13 = vector.load %arg6[%c0_9, %c0_10, %c0_11] : memref<2x16x16xf32, #tpu.memory_space<vmem>>, vector<1x16x16xf32>
      %14 = vector.shape_cast %13 : vector<1x16x16xf32> to vector<16x16xf32>
      %15 = vector.shape_cast %2 : vector<16x16xf32> to vector<1x16x16xf32>
      tpu.vector_store %arg6[%c0_9, %c0_10, %c0_11], %15 {strides = array<i32>} : memref<2x16x16xf32, #tpu.memory_space<vmem>>, vector<1x16x16xf32>,
      %c1 = arith.constant 1 : index
      %c0_12 = arith.constant 0 : index
      %c0_13 = arith.constant 0 : index
      %16 = vector.load %arg6[%c1, %c0_12, %c0_13] : memref<2x16x16xf32, #tpu.memory_space<vmem>>, vector<1x16x16xf32>
      %17 = vector.shape_cast %16 : vector<1x16x16xf32> to vector<16x16xf32>
      %18 = vector.shape_cast %3 : vector<16x16xf32> to vector<1x16x16xf32>
      tpu.vector_store %arg6[%c1, %c0_12, %c0_13], %18 {strides = array<i32>} : memref<2x16x16xf32, #tpu.memory_space<vmem>>, vector<1x16x16xf32>,
    } else {
    }
    %c0_i32_5 = arith.constant 0 : i32
    %7 = arith.cmpi sgt, %arg1, %c0_i32_5 : i32
    %8 = arith.extui %7 : i1 to i32
    %c0_i32_6 = arith.constant 0 : i32
    %9 = arith.cmpi ne, %8, %c0_i32_6 : i32
    scf.if %9 {
      %c0_9 = arith.constant 0 : index
      %c0_10 = arith.constant 0 : index
      %c0_11 = arith.constant 0 : index
      %13 = vector.load %arg6[%c0_9, %c0_10, %c0_11] : memref<2x16x16xf32, #tpu.memory_space<vmem>>, vector<1x16x16xf32>
      %14 = vector.shape_cast %13 : vector<1x16x16xf32> to vector<16x16xf32>
      %15 = arith.addf %14, %2 : vector<16x16xf32>
      %c0_12 = arith.constant 0 : index
      %c0_13 = arith.constant 0 : index
      %c0_14 = arith.constant 0 : index
      %16 = vector.load %arg6[%c0_12, %c0_13, %c0_14] : memref<2x16x16xf32, #tpu.memory_space<vmem>>, vector<1x16x16xf32>
      %17 = vector.shape_cast %16 : vector<1x16x16xf32> to vector<16x16xf32>
      %18 = vector.shape_cast %15 : vector<16x16xf32> to vector<1x16x16xf32>
      tpu.vector_store %arg6[%c0_12, %c0_13, %c0_14], %18 {strides = array<i32>} : memref<2x16x16xf32, #tpu.memory_space<vmem>>, vector<1x16x16xf32>,
      %c1 = arith.constant 1 : index
      %c0_15 = arith.constant 0 : index
      %c0_16 = arith.constant 0 : index
      %19 = vector.load %arg6[%c1, %c0_15, %c0_16] : memref<2x16x16xf32, #tpu.memory_space<vmem>>, vector<1x16x16xf32>
      %20 = vector.shape_cast %19 : vector<1x16x16xf32> to vector<16x16xf32>
      %21 = arith.maximumf %20, %3 : vector<16x16xf32>
      %c1_17 = arith.constant 1 : index
      %c0_18 = arith.constant 0 : index
      %c0_19 = arith.constant 0 : index
      %22 = vector.load %arg6[%c1_17, %c0_18, %c0_19] : memref<2x16x16xf32, #tpu.memory_space<vmem>>, vector<1x16x16xf32>
      %23 = vector.shape_cast %22 : vector<1x16x16xf32> to vector<16x16xf32>
      %24 = vector.shape_cast %21 : vector<16x16xf32> to vector<1x16x16xf32>
      tpu.vector_store %arg6[%c1_17, %c0_18, %c0_19], %24 {strides = array<i32>} : memref<2x16x16xf32, #tpu.memory_space<vmem>>, vector<1x16x16xf32>,
    } else {
    }
    %c0_i32_7 = arith.constant 0 : i32
    %10 = arith.cmpi eq, %arg1, %c0_i32_7 : i32
    %11 = arith.extui %10 : i1 to i32
    %c0_i32_8 = arith.constant 0 : i32
    %12 = arith.cmpi ne, %11, %c0_i32_8 : i32
    scf.if %12 {
      %cst_9 = arith.constant 0.000000e+00 : f32
      %13 = vector.broadcast %cst_9 : f32 to vector<2x22x22xf32>
      %c0_10 = arith.constant 0 : index
      %c0_11 = arith.constant 0 : index
      %c0_12 = arith.constant 0 : index
      %14 = vector.load %arg7[%c0_10, %c0_11, %c0_12] : memref<2x22x22xf32, #tpu.memory_space<vmem>>, vector<2x22x22xf32>
      tpu.vector_store %arg7[%c0_10, %c0_11, %c0_12], %13 {strides = array<i32>} : memref<2x22x22xf32, #tpu.memory_space<vmem>>, vector<2x22x22xf32>,
      %c0_13 = arith.constant 0 : index
      %c0_14 = arith.constant 0 : index
      %c0_15 = arith.constant 0 : index
      %15 = vector.load %arg6[%c0_13, %c0_14, %c0_15] : memref<2x16x16xf32, #tpu.memory_space<vmem>>, vector<1x16x16xf32>
      %16 = vector.shape_cast %15 : vector<1x16x16xf32> to vector<16x16xf32>
      %c0_16 = arith.constant 0 : index
      %c3 = arith.constant 3 : index
      %c3_17 = arith.constant 3 : index
      %17 = vector.load %arg7[%c0_16, %c3, %c3_17] : memref<2x22x22xf32, #tpu.memory_space<vmem>>, vector<1x16x16xf32>
      %18 = vector.shape_cast %17 : vector<1x16x16xf32> to vector<16x16xf32>
      %19 = vector.shape_cast %16 : vector<16x16xf32> to vector<1x16x16xf32>
      tpu.vector_store %arg7[%c0_16, %c3, %c3_17], %19 {strides = array<i32>} : memref<2x22x22xf32, #tpu.memory_space<vmem>>, vector<1x16x16xf32>,
      %c1 = arith.constant 1 : index
      %c0_18 = arith.constant 0 : index
      %c0_19 = arith.constant 0 : index
      %20 = vector.load %arg6[%c1, %c0_18, %c0_19] : memref<2x16x16xf32, #tpu.memory_space<vmem>>, vector<1x16x16xf32>
      %21 = vector.shape_cast %20 : vector<1x16x16xf32> to vector<16x16xf32>
      %c1_20 = arith.constant 1 : index
      %c3_21 = arith.constant 3 : index
      %c3_22 = arith.constant 3 : index
      %22 = vector.load %arg7[%c1_20, %c3_21, %c3_22] : memref<2x22x22xf32, #tpu.memory_space<vmem>>, vector<1x16x16xf32>
      %23 = vector.shape_cast %22 : vector<1x16x16xf32> to vector<16x16xf32>
      %24 = vector.shape_cast %21 : vector<16x16xf32> to vector<1x16x16xf32>
      tpu.vector_store %arg7[%c1_20, %c3_21, %c3_22], %24 {strides = array<i32>} : memref<2x22x22xf32, #tpu.memory_space<vmem>>, vector<1x16x16xf32>,
      %cst_23 = arith.constant 0.000000e+00 : f32
      %25 = vector.broadcast %cst_23 : f32 to vector<16x16xf32>
      %c0_24 = arith.constant 0 : index
      %c0_25 = arith.constant 0 : index
      %c0_26 = arith.constant 0 : index
      %26 = vector.load %arg7[%c0_24, %c0_25, %c0_26] : memref<2x22x22xf32, #tpu.memory_space<vmem>>, vector<1x16x22xf32>
      %27 = vector.shape_cast %26 : vector<1x16x22xf32> to vector<16x22xf32>
      %c0_27 = arith.constant 0 : index
      %28 = memref.load %arg2[%c0_27] : memref<98xf32, #tpu.memory_space<smem>>
      %29 = vector.extract_strided_slice %27 {offsets = [0, 0], sizes = [16, 16], strides = [1, 1]} : vector<16x22xf32> to vector<16x16xf32>
      %30 = vector.broadcast %28 : f32 to vector<16x16xf32>
      %31 = arith.mulf %30, %29 : vector<16x16xf32>
      %32 = arith.addf %25, %31 : vector<16x16xf32>
      %c1_28 = arith.constant 1 : index
      %33 = memref.load %arg2[%c1_28] : memref<98xf32, #tpu.memory_space<smem>>
      %34 = vector.extract_strided_slice %27 {offsets = [0, 1], sizes = [16, 16], strides = [1, 1]} : vector<16x22xf32> to vector<16x16xf32>
      %35 = vector.broadcast %33 : f32 to vector<16x16xf32>
      %36 = arith.mulf %35, %34 : vector<16x16xf32>
      %37 = arith.addf %32, %36 : vector<16x16xf32>
      %c2 = arith.constant 2 : index
      %38 = memref.load %arg2[%c2] : memref<98xf32, #tpu.memory_space<smem>>
      %39 = vector.extract_strided_slice %27 {offsets = [0, 2], sizes = [16, 16], strides = [1, 1]} : vector<16x22xf32> to vector<16x16xf32>
      %40 = vector.broadcast %38 : f32 to vector<16x16xf32>
      %41 = arith.mulf %40, %39 : vector<16x16xf32>
      %42 = arith.addf %37, %41 : vector<16x16xf32>
      %c3_29 = arith.constant 3 : index
      %43 = memref.load %arg2[%c3_29] : memref<98xf32, #tpu.memory_space<smem>>
      %44 = vector.extract_strided_slice %27 {offsets = [0, 3], sizes = [16, 16], strides = [1, 1]} : vector<16x22xf32> to vector<16x16xf32>
      %45 = vector.broadcast %43 : f32 to vector<16x16xf32>
      %46 = arith.mulf %45, %44 : vector<16x16xf32>
      %47 = arith.addf %42, %46 : vector<16x16xf32>
      %c4 = arith.constant 4 : index
      %48 = memref.load %arg2[%c4] : memref<98xf32, #tpu.memory_space<smem>>
      %49 = vector.extract_strided_slice %27 {offsets = [0, 4], sizes = [16, 16], strides = [1, 1]} : vector<16x22xf32> to vector<16x16xf32>
      %50 = vector.broadcast %48 : f32 to vector<16x16xf32>
      %51 = arith.mulf %50, %49 : vector<16x16xf32>
      %52 = arith.addf %47, %51 : vector<16x16xf32>
      %c5 = arith.constant 5 : index
      %53 = memref.load %arg2[%c5] : memref<98xf32, #tpu.memory_space<smem>>
      %54 = vector.extract_strided_slice %27 {offsets = [0, 5], sizes = [16, 16], strides = [1, 1]} : vector<16x22xf32> to vector<16x16xf32>
      %55 = vector.broadcast %53 : f32 to vector<16x16xf32>
      %56 = arith.mulf %55, %54 : vector<16x16xf32>
      %57 = arith.addf %52, %56 : vector<16x16xf32>
      %c6 = arith.constant 6 : index
      %58 = memref.load %arg2[%c6] : memref<98xf32, #tpu.memory_space<smem>>
      %59 = vector.extract_strided_slice %27 {offsets = [0, 6], sizes = [16, 16], strides = [1, 1]} : vector<16x22xf32> to vector<16x16xf32>
      %60 = vector.broadcast %58 : f32 to vector<16x16xf32>
      %61 = arith.mulf %60, %59 : vector<16x16xf32>
      %62 = arith.addf %57, %61 : vector<16x16xf32>
      %c0_30 = arith.constant 0 : index
      %c1_31 = arith.constant 1 : index
      %c0_32 = arith.constant 0 : index
      %63 = vector.load %arg7[%c0_30, %c1_31, %c0_32] : memref<2x22x22xf32, #tpu.memory_space<vmem>>, vector<1x16x22xf32>
      %64 = vector.shape_cast %63 : vector<1x16x22xf32> to vector<16x22xf32>
      %c7 = arith.constant 7 : index
      %65 = memref.load %arg2[%c7] : memref<98xf32, #tpu.memory_space<smem>>
      %66 = vector.extract_strided_slice %64 {offsets = [0, 0], sizes = [16, 16], strides = [1, 1]} : vector<16x22xf32> to vector<16x16xf32>
      %67 = vector.broadcast %65 : f32 to vector<16x16xf32>
      %68 = arith.mulf %67, %66 : vector<16x16xf32>
      %69 = arith.addf %62, %68 : vector<16x16xf32>
      %c8 = arith.constant 8 : index
      %70 = memref.load %arg2[%c8] : memref<98xf32, #tpu.memory_space<smem>>
      %71 = vector.extract_strided_slice %64 {offsets = [0, 1], sizes = [16, 16], strides = [1, 1]} : vector<16x22xf32> to vector<16x16xf32>
      %72 = vector.broadcast %70 : f32 to vector<16x16xf32>
      %73 = arith.mulf %72, %71 : vector<16x16xf32>
      %74 = arith.addf %69, %73 : vector<16x16xf32>
      %c9 = arith.constant 9 : index
      %75 = memref.load %arg2[%c9] : memref<98xf32, #tpu.memory_space<smem>>
      %76 = vector.extract_strided_slice %64 {offsets = [0, 2], sizes = [16, 16], strides = [1, 1]} : vector<16x22xf32> to vector<16x16xf32>
      %77 = vector.broadcast %75 : f32 to vector<16x16xf32>
      %78 = arith.mulf %77, %76 : vector<16x16xf32>
      %79 = arith.addf %74, %78 : vector<16x16xf32>
      %c10 = arith.constant 10 : index
      %80 = memref.load %arg2[%c10] : memref<98xf32, #tpu.memory_space<smem>>
      %81 = vector.extract_strided_slice %64 {offsets = [0, 3], sizes = [16, 16], strides = [1, 1]} : vector<16x22xf32> to vector<16x16xf32>
      %82 = vector.broadcast %80 : f32 to vector<16x16xf32>
      %83 = arith.mulf %82, %81 : vector<16x16xf32>
      %84 = arith.addf %79, %83 : vector<16x16xf32>
      %c11 = arith.constant 11 : index
      %85 = memref.load %arg2[%c11] : memref<98xf32, #tpu.memory_space<smem>>
      %86 = vector.extract_strided_slice %64 {offsets = [0, 4], sizes = [16, 16], strides = [1, 1]} : vector<16x22xf32> to vector<16x16xf32>
      %87 = vector.broadcast %85 : f32 to vector<16x16xf32>
      %88 = arith.mulf %87, %86 : vector<16x16xf32>
      %89 = arith.addf %84, %88 : vector<16x16xf32>
      %c12 = arith.constant 12 : index
      %90 = memref.load %arg2[%c12] : memref<98xf32, #tpu.memory_space<smem>>
      %91 = vector.extract_strided_slice %64 {offsets = [0, 5], sizes = [16, 16], strides = [1, 1]} : vector<16x22xf32> to vector<16x16xf32>
      %92 = vector.broadcast %90 : f32 to vector<16x16xf32>
      %93 = arith.mulf %92, %91 : vector<16x16xf32>
      %94 = arith.addf %89, %93 : vector<16x16xf32>
      %c13 = arith.constant 13 : index
      %95 = memref.load %arg2[%c13] : memref<98xf32, #tpu.memory_space<smem>>
      %96 = vector.extract_strided_slice %64 {offsets = [0, 6], sizes = [16, 16], strides = [1, 1]} : vector<16x22xf32> to vector<16x16xf32>
      %97 = vector.broadcast %95 : f32 to vector<16x16xf32>
      %98 = arith.mulf %97, %96 : vector<16x16xf32>
      %99 = arith.addf %94, %98 : vector<16x16xf32>
      %c0_33 = arith.constant 0 : index
      %c2_34 = arith.constant 2 : index
      %c0_35 = arith.constant 0 : index
      %100 = vector.load %arg7[%c0_33, %c2_34, %c0_35] : memref<2x22x22xf32, #tpu.memory_space<vmem>>, vector<1x16x22xf32>
      %101 = vector.shape_cast %100 : vector<1x16x22xf32> to vector<16x22xf32>
      %c14 = arith.constant 14 : index
      %102 = memref.load %arg2[%c14] : memref<98xf32, #tpu.memory_space<smem>>
      %103 = vector.extract_strided_slice %101 {offsets = [0, 0], sizes = [16, 16], strides = [1, 1]} : vector<16x22xf32> to vector<16x16xf32>
      %104 = vector.broadcast %102 : f32 to vector<16x16xf32>
      %105 = arith.mulf %104, %103 : vector<16x16xf32>
      %106 = arith.addf %99, %105 : vector<16x16xf32>
      %c15 = arith.constant 15 : index
      %107 = memref.load %arg2[%c15] : memref<98xf32, #tpu.memory_space<smem>>
      %108 = vector.extract_strided_slice %101 {offsets = [0, 1], sizes = [16, 16], strides = [1, 1]} : vector<16x22xf32> to vector<16x16xf32>
      %109 = vector.broadcast %107 : f32 to vector<16x16xf32>
      %110 = arith.mulf %109, %108 : vector<16x16xf32>
      %111 = arith.addf %106, %110 : vector<16x16xf32>
      %c16 = arith.constant 16 : index
      %112 = memref.load %arg2[%c16] : memref<98xf32, #tpu.memory_space<smem>>
      %113 = vector.extract_strided_slice %101 {offsets = [0, 2], sizes = [16, 16], strides = [1, 1]} : vector<16x22xf32> to vector<16x16xf32>
      %114 = vector.broadcast %112 : f32 to vector<16x16xf32>
      %115 = arith.mulf %114, %113 : vector<16x16xf32>
      %116 = arith.addf %111, %115 : vector<16x16xf32>
      %c17 = arith.constant 17 : index
      %117 = memref.load %arg2[%c17] : memref<98xf32, #tpu.memory_space<smem>>
      %118 = vector.extract_strided_slice %101 {offsets = [0, 3], sizes = [16, 16], strides = [1, 1]} : vector<16x22xf32> to vector<16x16xf32>
      %119 = vector.broadcast %117 : f32 to vector<16x16xf32>
      %120 = arith.mulf %119, %118 : vector<16x16xf32>
      %121 = arith.addf %116, %120 : vector<16x16xf32>
      %c18 = arith.constant 18 : index
      %122 = memref.load %arg2[%c18] : memref<98xf32, #tpu.memory_space<smem>>
      %123 = vector.extract_strided_slice %101 {offsets = [0, 4], sizes = [16, 16], strides = [1, 1]} : vector<16x22xf32> to vector<16x16xf32>
      %124 = vector.broadcast %122 : f32 to vector<16x16xf32>
      %125 = arith.mulf %124, %123 : vector<16x16xf32>
      %126 = arith.addf %121, %125 : vector<16x16xf32>
      %c19 = arith.constant 19 : index
      %127 = memref.load %arg2[%c19] : memref<98xf32, #tpu.memory_space<smem>>
      %128 = vector.extract_strided_slice %101 {offsets = [0, 5], sizes = [16, 16], strides = [1, 1]} : vector<16x22xf32> to vector<16x16xf32>
      %129 = vector.broadcast %127 : f32 to vector<16x16xf32>
      %130 = arith.mulf %129, %128 : vector<16x16xf32>
      %131 = arith.addf %126, %130 : vector<16x16xf32>
      %c20 = arith.constant 20 : index
      %132 = memref.load %arg2[%c20] : memref<98xf32, #tpu.memory_space<smem>>
      %133 = vector.extract_strided_slice %101 {offsets = [0, 6], sizes = [16, 16], strides = [1, 1]} : vector<16x22xf32> to vector<16x16xf32>
      %134 = vector.broadcast %132 : f32 to vector<16x16xf32>
      %135 = arith.mulf %134, %133 : vector<16x16xf32>
      %136 = arith.addf %131, %135 : vector<16x16xf32>
      %c0_36 = arith.constant 0 : index
      %c3_37 = arith.constant 3 : index
      %c0_38 = arith.constant 0 : index
      %137 = vector.load %arg7[%c0_36, %c3_37, %c0_38] : memref<2x22x22xf32, #tpu.memory_space<vmem>>, vector<1x16x22xf32>
      %138 = vector.shape_cast %137 : vector<1x16x22xf32> to vector<16x22xf32>
      %c21 = arith.constant 21 : index
      %139 = memref.load %arg2[%c21] : memref<98xf32, #tpu.memory_space<smem>>
      %140 = vector.extract_strided_slice %138 {offsets = [0, 0], sizes = [16, 16], strides = [1, 1]} : vector<16x22xf32> to vector<16x16xf32>
      %141 = vector.broadcast %139 : f32 to vector<16x16xf32>
      %142 = arith.mulf %141, %140 : vector<16x16xf32>
      %143 = arith.addf %136, %142 : vector<16x16xf32>
      %c22 = arith.constant 22 : index
      %144 = memref.load %arg2[%c22] : memref<98xf32, #tpu.memory_space<smem>>
      %145 = vector.extract_strided_slice %138 {offsets = [0, 1], sizes = [16, 16], strides = [1, 1]} : vector<16x22xf32> to vector<16x16xf32>
      %146 = vector.broadcast %144 : f32 to vector<16x16xf32>
      %147 = arith.mulf %146, %145 : vector<16x16xf32>
      %148 = arith.addf %143, %147 : vector<16x16xf32>
      %c23 = arith.constant 23 : index
      %149 = memref.load %arg2[%c23] : memref<98xf32, #tpu.memory_space<smem>>
      %150 = vector.extract_strided_slice %138 {offsets = [0, 2], sizes = [16, 16], strides = [1, 1]} : vector<16x22xf32> to vector<16x16xf32>
      %151 = vector.broadcast %149 : f32 to vector<16x16xf32>
      %152 = arith.mulf %151, %150 : vector<16x16xf32>
      %153 = arith.addf %148, %152 : vector<16x16xf32>
      %c24 = arith.constant 24 : index
      %154 = memref.load %arg2[%c24] : memref<98xf32, #tpu.memory_space<smem>>
      %155 = vector.extract_strided_slice %138 {offsets = [0, 3], sizes = [16, 16], strides = [1, 1]} : vector<16x22xf32> to vector<16x16xf32>
      %156 = vector.broadcast %154 : f32 to vector<16x16xf32>
      %157 = arith.mulf %156, %155 : vector<16x16xf32>
      %158 = arith.addf %153, %157 : vector<16x16xf32>
      %c25 = arith.constant 25 : index
      %159 = memref.load %arg2[%c25] : memref<98xf32, #tpu.memory_space<smem>>
      %160 = vector.extract_strided_slice %138 {offsets = [0, 4], sizes = [16, 16], strides = [1, 1]} : vector<16x22xf32> to vector<16x16xf32>
      %161 = vector.broadcast %159 : f32 to vector<16x16xf32>
      %162 = arith.mulf %161, %160 : vector<16x16xf32>
      %163 = arith.addf %158, %162 : vector<16x16xf32>
      %c26 = arith.constant 26 : index
      %164 = memref.load %arg2[%c26] : memref<98xf32, #tpu.memory_space<smem>>
      %165 = vector.extract_strided_slice %138 {offsets = [0, 5], sizes = [16, 16], strides = [1, 1]} : vector<16x22xf32> to vector<16x16xf32>
      %166 = vector.broadcast %164 : f32 to vector<16x16xf32>
      %167 = arith.mulf %166, %165 : vector<16x16xf32>
      %168 = arith.addf %163, %167 : vector<16x16xf32>
      %c27 = arith.constant 27 : index
      %169 = memref.load %arg2[%c27] : memref<98xf32, #tpu.memory_space<smem>>
      %170 = vector.extract_strided_slice %138 {offsets = [0, 6], sizes = [16, 16], strides = [1, 1]} : vector<16x22xf32> to vector<16x16xf32>
      %171 = vector.broadcast %169 : f32 to vector<16x16xf32>
      %172 = arith.mulf %171, %170 : vector<16x16xf32>
      %173 = arith.addf %168, %172 : vector<16x16xf32>
      %c0_39 = arith.constant 0 : index
      %c4_40 = arith.constant 4 : index
      %c0_41 = arith.constant 0 : index
      %174 = vector.load %arg7[%c0_39, %c4_40, %c0_41] : memref<2x22x22xf32, #tpu.memory_space<vmem>>, vector<1x16x22xf32>
      %175 = vector.shape_cast %174 : vector<1x16x22xf32> to vector<16x22xf32>
      %c28 = arith.constant 28 : index
      %176 = memref.load %arg2[%c28] : memref<98xf32, #tpu.memory_space<smem>>
      %177 = vector.extract_strided_slice %175 {offsets = [0, 0], sizes = [16, 16], strides = [1, 1]} : vector<16x22xf32> to vector<16x16xf32>
      %178 = vector.broadcast %176 : f32 to vector<16x16xf32>
      %179 = arith.mulf %178, %177 : vector<16x16xf32>
      %180 = arith.addf %173, %179 : vector<16x16xf32>
      %c29 = arith.constant 29 : index
      %181 = memref.load %arg2[%c29] : memref<98xf32, #tpu.memory_space<smem>>
      %182 = vector.extract_strided_slice %175 {offsets = [0, 1], sizes = [16, 16], strides = [1, 1]} : vector<16x22xf32> to vector<16x16xf32>
      %183 = vector.broadcast %181 : f32 to vector<16x16xf32>
      %184 = arith.mulf %183, %182 : vector<16x16xf32>
      %185 = arith.addf %180, %184 : vector<16x16xf32>
      %c30 = arith.constant 30 : index
      %186 = memref.load %arg2[%c30] : memref<98xf32, #tpu.memory_space<smem>>
      %187 = vector.extract_strided_slice %175 {offsets = [0, 2], sizes = [16, 16], strides = [1, 1]} : vector<16x22xf32> to vector<16x16xf32>
      %188 = vector.broadcast %186 : f32 to vector<16x16xf32>
      %189 = arith.mulf %188, %187 : vector<16x16xf32>
      %190 = arith.addf %185, %189 : vector<16x16xf32>
      %c31 = arith.constant 31 : index
      %191 = memref.load %arg2[%c31] : memref<98xf32, #tpu.memory_space<smem>>
      %192 = vector.extract_strided_slice %175 {offsets = [0, 3], sizes = [16, 16], strides = [1, 1]} : vector<16x22xf32> to vector<16x16xf32>
      %193 = vector.broadcast %191 : f32 to vector<16x16xf32>
      %194 = arith.mulf %193, %192 : vector<16x16xf32>
      %195 = arith.addf %190, %194 : vector<16x16xf32>
      %c32 = arith.constant 32 : index
      %196 = memref.load %arg2[%c32] : memref<98xf32, #tpu.memory_space<smem>>
      %197 = vector.extract_strided_slice %175 {offsets = [0, 4], sizes = [16, 16], strides = [1, 1]} : vector<16x22xf32> to vector<16x16xf32>
      %198 = vector.broadcast %196 : f32 to vector<16x16xf32>
      %199 = arith.mulf %198, %197 : vector<16x16xf32>
      %200 = arith.addf %195, %199 : vector<16x16xf32>
      %c33 = arith.constant 33 : index
      %201 = memref.load %arg2[%c33] : memref<98xf32, #tpu.memory_space<smem>>
      %202 = vector.extract_strided_slice %175 {offsets = [0, 5], sizes = [16, 16], strides = [1, 1]} : vector<16x22xf32> to vector<16x16xf32>
      %203 = vector.broadcast %201 : f32 to vector<16x16xf32>
      %204 = arith.mulf %203, %202 : vector<16x16xf32>
      %205 = arith.addf %200, %204 : vector<16x16xf32>
      %c34 = arith.constant 34 : index
      %206 = memref.load %arg2[%c34] : memref<98xf32, #tpu.memory_space<smem>>
      %207 = vector.extract_strided_slice %175 {offsets = [0, 6], sizes = [16, 16], strides = [1, 1]} : vector<16x22xf32> to vector<16x16xf32>
      %208 = vector.broadcast %206 : f32 to vector<16x16xf32>
      %209 = arith.mulf %208, %207 : vector<16x16xf32>
      %210 = arith.addf %205, %209 : vector<16x16xf32>
      %c0_42 = arith.constant 0 : index
      %c5_43 = arith.constant 5 : index
      %c0_44 = arith.constant 0 : index
      %211 = vector.load %arg7[%c0_42, %c5_43, %c0_44] : memref<2x22x22xf32, #tpu.memory_space<vmem>>, vector<1x16x22xf32>
      %212 = vector.shape_cast %211 : vector<1x16x22xf32> to vector<16x22xf32>
      %c35 = arith.constant 35 : index
      %213 = memref.load %arg2[%c35] : memref<98xf32, #tpu.memory_space<smem>>
      %214 = vector.extract_strided_slice %212 {offsets = [0, 0], sizes = [16, 16], strides = [1, 1]} : vector<16x22xf32> to vector<16x16xf32>
      %215 = vector.broadcast %213 : f32 to vector<16x16xf32>
      %216 = arith.mulf %215, %214 : vector<16x16xf32>
      %217 = arith.addf %210, %216 : vector<16x16xf32>
      %c36 = arith.constant 36 : index
      %218 = memref.load %arg2[%c36] : memref<98xf32, #tpu.memory_space<smem>>
      %219 = vector.extract_strided_slice %212 {offsets = [0, 1], sizes = [16, 16], strides = [1, 1]} : vector<16x22xf32> to vector<16x16xf32>
      %220 = vector.broadcast %218 : f32 to vector<16x16xf32>
      %221 = arith.mulf %220, %219 : vector<16x16xf32>
      %222 = arith.addf %217, %221 : vector<16x16xf32>
      %c37 = arith.constant 37 : index
      %223 = memref.load %arg2[%c37] : memref<98xf32, #tpu.memory_space<smem>>
      %224 = vector.extract_strided_slice %212 {offsets = [0, 2], sizes = [16, 16], strides = [1, 1]} : vector<16x22xf32> to vector<16x16xf32>
      %225 = vector.broadcast %223 : f32 to vector<16x16xf32>
      %226 = arith.mulf %225, %224 : vector<16x16xf32>
      %227 = arith.addf %222, %226 : vector<16x16xf32>
      %c38 = arith.constant 38 : index
      %228 = memref.load %arg2[%c38] : memref<98xf32, #tpu.memory_space<smem>>
      %229 = vector.extract_strided_slice %212 {offsets = [0, 3], sizes = [16, 16], strides = [1, 1]} : vector<16x22xf32> to vector<16x16xf32>
      %230 = vector.broadcast %228 : f32 to vector<16x16xf32>
      %231 = arith.mulf %230, %229 : vector<16x16xf32>
      %232 = arith.addf %227, %231 : vector<16x16xf32>
      %c39 = arith.constant 39 : index
      %233 = memref.load %arg2[%c39] : memref<98xf32, #tpu.memory_space<smem>>
      %234 = vector.extract_strided_slice %212 {offsets = [0, 4], sizes = [16, 16], strides = [1, 1]} : vector<16x22xf32> to vector<16x16xf32>
      %235 = vector.broadcast %233 : f32 to vector<16x16xf32>
      %236 = arith.mulf %235, %234 : vector<16x16xf32>
      %237 = arith.addf %232, %236 : vector<16x16xf32>
      %c40 = arith.constant 40 : index
      %238 = memref.load %arg2[%c40] : memref<98xf32, #tpu.memory_space<smem>>
      %239 = vector.extract_strided_slice %212 {offsets = [0, 5], sizes = [16, 16], strides = [1, 1]} : vector<16x22xf32> to vector<16x16xf32>
      %240 = vector.broadcast %238 : f32 to vector<16x16xf32>
      %241 = arith.mulf %240, %239 : vector<16x16xf32>
      %242 = arith.addf %237, %241 : vector<16x16xf32>
      %c41 = arith.constant 41 : index
      %243 = memref.load %arg2[%c41] : memref<98xf32, #tpu.memory_space<smem>>
      %244 = vector.extract_strided_slice %212 {offsets = [0, 6], sizes = [16, 16], strides = [1, 1]} : vector<16x22xf32> to vector<16x16xf32>
      %245 = vector.broadcast %243 : f32 to vector<16x16xf32>
      %246 = arith.mulf %245, %244 : vector<16x16xf32>
      %247 = arith.addf %242, %246 : vector<16x16xf32>
      %c0_45 = arith.constant 0 : index
      %c6_46 = arith.constant 6 : index
      %c0_47 = arith.constant 0 : index
      %248 = vector.load %arg7[%c0_45, %c6_46, %c0_47] : memref<2x22x22xf32, #tpu.memory_space<vmem>>, vector<1x16x22xf32>
      %249 = vector.shape_cast %248 : vector<1x16x22xf32> to vector<16x22xf32>
      %c42 = arith.constant 42 : index
      %250 = memref.load %arg2[%c42] : memref<98xf32, #tpu.memory_space<smem>>
      %251 = vector.extract_strided_slice %249 {offsets = [0, 0], sizes = [16, 16], strides = [1, 1]} : vector<16x22xf32> to vector<16x16xf32>
      %252 = vector.broadcast %250 : f32 to vector<16x16xf32>
      %253 = arith.mulf %252, %251 : vector<16x16xf32>
      %254 = arith.addf %247, %253 : vector<16x16xf32>
      %c43 = arith.constant 43 : index
      %255 = memref.load %arg2[%c43] : memref<98xf32, #tpu.memory_space<smem>>
      %256 = vector.extract_strided_slice %249 {offsets = [0, 1], sizes = [16, 16], strides = [1, 1]} : vector<16x22xf32> to vector<16x16xf32>
      %257 = vector.broadcast %255 : f32 to vector<16x16xf32>
      %258 = arith.mulf %257, %256 : vector<16x16xf32>
      %259 = arith.addf %254, %258 : vector<16x16xf32>
      %c44 = arith.constant 44 : index
      %260 = memref.load %arg2[%c44] : memref<98xf32, #tpu.memory_space<smem>>
      %261 = vector.extract_strided_slice %249 {offsets = [0, 2], sizes = [16, 16], strides = [1, 1]} : vector<16x22xf32> to vector<16x16xf32>
      %262 = vector.broadcast %260 : f32 to vector<16x16xf32>
      %263 = arith.mulf %262, %261 : vector<16x16xf32>
      %264 = arith.addf %259, %263 : vector<16x16xf32>
      %c45 = arith.constant 45 : index
      %265 = memref.load %arg2[%c45] : memref<98xf32, #tpu.memory_space<smem>>
      %266 = vector.extract_strided_slice %249 {offsets = [0, 3], sizes = [16, 16], strides = [1, 1]} : vector<16x22xf32> to vector<16x16xf32>
      %267 = vector.broadcast %265 : f32 to vector<16x16xf32>
      %268 = arith.mulf %267, %266 : vector<16x16xf32>
      %269 = arith.addf %264, %268 : vector<16x16xf32>
      %c46 = arith.constant 46 : index
      %270 = memref.load %arg2[%c46] : memref<98xf32, #tpu.memory_space<smem>>
      %271 = vector.extract_strided_slice %249 {offsets = [0, 4], sizes = [16, 16], strides = [1, 1]} : vector<16x22xf32> to vector<16x16xf32>
      %272 = vector.broadcast %270 : f32 to vector<16x16xf32>
      %273 = arith.mulf %272, %271 : vector<16x16xf32>
      %274 = arith.addf %269, %273 : vector<16x16xf32>
      %c47 = arith.constant 47 : index
      %275 = memref.load %arg2[%c47] : memref<98xf32, #tpu.memory_space<smem>>
      %276 = vector.extract_strided_slice %249 {offsets = [0, 5], sizes = [16, 16], strides = [1, 1]} : vector<16x22xf32> to vector<16x16xf32>
      %277 = vector.broadcast %275 : f32 to vector<16x16xf32>
      %278 = arith.mulf %277, %276 : vector<16x16xf32>
      %279 = arith.addf %274, %278 : vector<16x16xf32>
      %c48 = arith.constant 48 : index
      %280 = memref.load %arg2[%c48] : memref<98xf32, #tpu.memory_space<smem>>
      %281 = vector.extract_strided_slice %249 {offsets = [0, 6], sizes = [16, 16], strides = [1, 1]} : vector<16x22xf32> to vector<16x16xf32>
      %282 = vector.broadcast %280 : f32 to vector<16x16xf32>
      %283 = arith.mulf %282, %281 : vector<16x16xf32>
      %284 = arith.addf %279, %283 : vector<16x16xf32>
      %c1_48 = arith.constant 1 : index
      %c0_49 = arith.constant 0 : index
      %c0_50 = arith.constant 0 : index
      %285 = vector.load %arg7[%c1_48, %c0_49, %c0_50] : memref<2x22x22xf32, #tpu.memory_space<vmem>>, vector<1x16x22xf32>
      %286 = vector.shape_cast %285 : vector<1x16x22xf32> to vector<16x22xf32>
      %c49 = arith.constant 49 : index
      %287 = memref.load %arg2[%c49] : memref<98xf32, #tpu.memory_space<smem>>
      %288 = vector.extract_strided_slice %286 {offsets = [0, 0], sizes = [16, 16], strides = [1, 1]} : vector<16x22xf32> to vector<16x16xf32>
      %289 = vector.broadcast %287 : f32 to vector<16x16xf32>
      %290 = arith.mulf %289, %288 : vector<16x16xf32>
      %291 = arith.addf %284, %290 : vector<16x16xf32>
      %c50 = arith.constant 50 : index
      %292 = memref.load %arg2[%c50] : memref<98xf32, #tpu.memory_space<smem>>
      %293 = vector.extract_strided_slice %286 {offsets = [0, 1], sizes = [16, 16], strides = [1, 1]} : vector<16x22xf32> to vector<16x16xf32>
      %294 = vector.broadcast %292 : f32 to vector<16x16xf32>
      %295 = arith.mulf %294, %293 : vector<16x16xf32>
      %296 = arith.addf %291, %295 : vector<16x16xf32>
      %c51 = arith.constant 51 : index
      %297 = memref.load %arg2[%c51] : memref<98xf32, #tpu.memory_space<smem>>
      %298 = vector.extract_strided_slice %286 {offsets = [0, 2], sizes = [16, 16], strides = [1, 1]} : vector<16x22xf32> to vector<16x16xf32>
      %299 = vector.broadcast %297 : f32 to vector<16x16xf32>
      %300 = arith.mulf %299, %298 : vector<16x16xf32>
      %301 = arith.addf %296, %300 : vector<16x16xf32>
      %c52 = arith.constant 52 : index
      %302 = memref.load %arg2[%c52] : memref<98xf32, #tpu.memory_space<smem>>
      %303 = vector.extract_strided_slice %286 {offsets = [0, 3], sizes = [16, 16], strides = [1, 1]} : vector<16x22xf32> to vector<16x16xf32>
      %304 = vector.broadcast %302 : f32 to vector<16x16xf32>
      %305 = arith.mulf %304, %303 : vector<16x16xf32>
      %306 = arith.addf %301, %305 : vector<16x16xf32>
      %c53 = arith.constant 53 : index
      %307 = memref.load %arg2[%c53] : memref<98xf32, #tpu.memory_space<smem>>
      %308 = vector.extract_strided_slice %286 {offsets = [0, 4], sizes = [16, 16], strides = [1, 1]} : vector<16x22xf32> to vector<16x16xf32>
      %309 = vector.broadcast %307 : f32 to vector<16x16xf32>
      %310 = arith.mulf %309, %308 : vector<16x16xf32>
      %311 = arith.addf %306, %310 : vector<16x16xf32>
      %c54 = arith.constant 54 : index
      %312 = memref.load %arg2[%c54] : memref<98xf32, #tpu.memory_space<smem>>
      %313 = vector.extract_strided_slice %286 {offsets = [0, 5], sizes = [16, 16], strides = [1, 1]} : vector<16x22xf32> to vector<16x16xf32>
      %314 = vector.broadcast %312 : f32 to vector<16x16xf32>
      %315 = arith.mulf %314, %313 : vector<16x16xf32>
      %316 = arith.addf %311, %315 : vector<16x16xf32>
      %c55 = arith.constant 55 : index
      %317 = memref.load %arg2[%c55] : memref<98xf32, #tpu.memory_space<smem>>
      %318 = vector.extract_strided_slice %286 {offsets = [0, 6], sizes = [16, 16], strides = [1, 1]} : vector<16x22xf32> to vector<16x16xf32>
      %319 = vector.broadcast %317 : f32 to vector<16x16xf32>
      %320 = arith.mulf %319, %318 : vector<16x16xf32>
      %321 = arith.addf %316, %320 : vector<16x16xf32>
      %c1_51 = arith.constant 1 : index
      %c1_52 = arith.constant 1 : index
      %c0_53 = arith.constant 0 : index
      %322 = vector.load %arg7[%c1_51, %c1_52, %c0_53] : memref<2x22x22xf32, #tpu.memory_space<vmem>>, vector<1x16x22xf32>
      %323 = vector.shape_cast %322 : vector<1x16x22xf32> to vector<16x22xf32>
      %c56 = arith.constant 56 : index
      %324 = memref.load %arg2[%c56] : memref<98xf32, #tpu.memory_space<smem>>
      %325 = vector.extract_strided_slice %323 {offsets = [0, 0], sizes = [16, 16], strides = [1, 1]} : vector<16x22xf32> to vector<16x16xf32>
      %326 = vector.broadcast %324 : f32 to vector<16x16xf32>
      %327 = arith.mulf %326, %325 : vector<16x16xf32>
      %328 = arith.addf %321, %327 : vector<16x16xf32>
      %c57 = arith.constant 57 : index
      %329 = memref.load %arg2[%c57] : memref<98xf32, #tpu.memory_space<smem>>
      %330 = vector.extract_strided_slice %323 {offsets = [0, 1], sizes = [16, 16], strides = [1, 1]} : vector<16x22xf32> to vector<16x16xf32>
      %331 = vector.broadcast %329 : f32 to vector<16x16xf32>
      %332 = arith.mulf %331, %330 : vector<16x16xf32>
      %333 = arith.addf %328, %332 : vector<16x16xf32>
      %c58 = arith.constant 58 : index
      %334 = memref.load %arg2[%c58] : memref<98xf32, #tpu.memory_space<smem>>
      %335 = vector.extract_strided_slice %323 {offsets = [0, 2], sizes = [16, 16], strides = [1, 1]} : vector<16x22xf32> to vector<16x16xf32>
      %336 = vector.broadcast %334 : f32 to vector<16x16xf32>
      %337 = arith.mulf %336, %335 : vector<16x16xf32>
      %338 = arith.addf %333, %337 : vector<16x16xf32>
      %c59 = arith.constant 59 : index
      %339 = memref.load %arg2[%c59] : memref<98xf32, #tpu.memory_space<smem>>
      %340 = vector.extract_strided_slice %323 {offsets = [0, 3], sizes = [16, 16], strides = [1, 1]} : vector<16x22xf32> to vector<16x16xf32>
      %341 = vector.broadcast %339 : f32 to vector<16x16xf32>
      %342 = arith.mulf %341, %340 : vector<16x16xf32>
      %343 = arith.addf %338, %342 : vector<16x16xf32>
      %c60 = arith.constant 60 : index
      %344 = memref.load %arg2[%c60] : memref<98xf32, #tpu.memory_space<smem>>
      %345 = vector.extract_strided_slice %323 {offsets = [0, 4], sizes = [16, 16], strides = [1, 1]} : vector<16x22xf32> to vector<16x16xf32>
      %346 = vector.broadcast %344 : f32 to vector<16x16xf32>
      %347 = arith.mulf %346, %345 : vector<16x16xf32>
      %348 = arith.addf %343, %347 : vector<16x16xf32>
      %c61 = arith.constant 61 : index
      %349 = memref.load %arg2[%c61] : memref<98xf32, #tpu.memory_space<smem>>
      %350 = vector.extract_strided_slice %323 {offsets = [0, 5], sizes = [16, 16], strides = [1, 1]} : vector<16x22xf32> to vector<16x16xf32>
      %351 = vector.broadcast %349 : f32 to vector<16x16xf32>
      %352 = arith.mulf %351, %350 : vector<16x16xf32>
      %353 = arith.addf %348, %352 : vector<16x16xf32>
      %c62 = arith.constant 62 : index
      %354 = memref.load %arg2[%c62] : memref<98xf32, #tpu.memory_space<smem>>
      %355 = vector.extract_strided_slice %323 {offsets = [0, 6], sizes = [16, 16], strides = [1, 1]} : vector<16x22xf32> to vector<16x16xf32>
      %356 = vector.broadcast %354 : f32 to vector<16x16xf32>
      %357 = arith.mulf %356, %355 : vector<16x16xf32>
      %358 = arith.addf %353, %357 : vector<16x16xf32>
      %c1_54 = arith.constant 1 : index
      %c2_55 = arith.constant 2 : index
      %c0_56 = arith.constant 0 : index
      %359 = vector.load %arg7[%c1_54, %c2_55, %c0_56] : memref<2x22x22xf32, #tpu.memory_space<vmem>>, vector<1x16x22xf32>
      %360 = vector.shape_cast %359 : vector<1x16x22xf32> to vector<16x22xf32>
      %c63 = arith.constant 63 : index
      %361 = memref.load %arg2[%c63] : memref<98xf32, #tpu.memory_space<smem>>
      %362 = vector.extract_strided_slice %360 {offsets = [0, 0], sizes = [16, 16], strides = [1, 1]} : vector<16x22xf32> to vector<16x16xf32>
      %363 = vector.broadcast %361 : f32 to vector<16x16xf32>
      %364 = arith.mulf %363, %362 : vector<16x16xf32>
      %365 = arith.addf %358, %364 : vector<16x16xf32>
      %c64 = arith.constant 64 : index
      %366 = memref.load %arg2[%c64] : memref<98xf32, #tpu.memory_space<smem>>
      %367 = vector.extract_strided_slice %360 {offsets = [0, 1], sizes = [16, 16], strides = [1, 1]} : vector<16x22xf32> to vector<16x16xf32>
      %368 = vector.broadcast %366 : f32 to vector<16x16xf32>
      %369 = arith.mulf %368, %367 : vector<16x16xf32>
      %370 = arith.addf %365, %369 : vector<16x16xf32>
      %c65 = arith.constant 65 : index
      %371 = memref.load %arg2[%c65] : memref<98xf32, #tpu.memory_space<smem>>
      %372 = vector.extract_strided_slice %360 {offsets = [0, 2], sizes = [16, 16], strides = [1, 1]} : vector<16x22xf32> to vector<16x16xf32>
      %373 = vector.broadcast %371 : f32 to vector<16x16xf32>
      %374 = arith.mulf %373, %372 : vector<16x16xf32>
      %375 = arith.addf %370, %374 : vector<16x16xf32>
      %c66 = arith.constant 66 : index
      %376 = memref.load %arg2[%c66] : memref<98xf32, #tpu.memory_space<smem>>
      %377 = vector.extract_strided_slice %360 {offsets = [0, 3], sizes = [16, 16], strides = [1, 1]} : vector<16x22xf32> to vector<16x16xf32>
      %378 = vector.broadcast %376 : f32 to vector<16x16xf32>
      %379 = arith.mulf %378, %377 : vector<16x16xf32>
      %380 = arith.addf %375, %379 : vector<16x16xf32>
      %c67 = arith.constant 67 : index
      %381 = memref.load %arg2[%c67] : memref<98xf32, #tpu.memory_space<smem>>
      %382 = vector.extract_strided_slice %360 {offsets = [0, 4], sizes = [16, 16], strides = [1, 1]} : vector<16x22xf32> to vector<16x16xf32>
      %383 = vector.broadcast %381 : f32 to vector<16x16xf32>
      %384 = arith.mulf %383, %382 : vector<16x16xf32>
      %385 = arith.addf %380, %384 : vector<16x16xf32>
      %c68 = arith.constant 68 : index
      %386 = memref.load %arg2[%c68] : memref<98xf32, #tpu.memory_space<smem>>
      %387 = vector.extract_strided_slice %360 {offsets = [0, 5], sizes = [16, 16], strides = [1, 1]} : vector<16x22xf32> to vector<16x16xf32>
      %388 = vector.broadcast %386 : f32 to vector<16x16xf32>
      %389 = arith.mulf %388, %387 : vector<16x16xf32>
      %390 = arith.addf %385, %389 : vector<16x16xf32>
      %c69 = arith.constant 69 : index
      %391 = memref.load %arg2[%c69] : memref<98xf32, #tpu.memory_space<smem>>
      %392 = vector.extract_strided_slice %360 {offsets = [0, 6], sizes = [16, 16], strides = [1, 1]} : vector<16x22xf32> to vector<16x16xf32>
      %393 = vector.broadcast %391 : f32 to vector<16x16xf32>
      %394 = arith.mulf %393, %392 : vector<16x16xf32>
      %395 = arith.addf %390, %394 : vector<16x16xf32>
      %c1_57 = arith.constant 1 : index
      %c3_58 = arith.constant 3 : index
      %c0_59 = arith.constant 0 : index
      %396 = vector.load %arg7[%c1_57, %c3_58, %c0_59] : memref<2x22x22xf32, #tpu.memory_space<vmem>>, vector<1x16x22xf32>
      %397 = vector.shape_cast %396 : vector<1x16x22xf32> to vector<16x22xf32>
      %c70 = arith.constant 70 : index
      %398 = memref.load %arg2[%c70] : memref<98xf32, #tpu.memory_space<smem>>
      %399 = vector.extract_strided_slice %397 {offsets = [0, 0], sizes = [16, 16], strides = [1, 1]} : vector<16x22xf32> to vector<16x16xf32>
      %400 = vector.broadcast %398 : f32 to vector<16x16xf32>
      %401 = arith.mulf %400, %399 : vector<16x16xf32>
      %402 = arith.addf %395, %401 : vector<16x16xf32>
      %c71 = arith.constant 71 : index
      %403 = memref.load %arg2[%c71] : memref<98xf32, #tpu.memory_space<smem>>
      %404 = vector.extract_strided_slice %397 {offsets = [0, 1], sizes = [16, 16], strides = [1, 1]} : vector<16x22xf32> to vector<16x16xf32>
      %405 = vector.broadcast %403 : f32 to vector<16x16xf32>
      %406 = arith.mulf %405, %404 : vector<16x16xf32>
      %407 = arith.addf %402, %406 : vector<16x16xf32>
      %c72 = arith.constant 72 : index
      %408 = memref.load %arg2[%c72] : memref<98xf32, #tpu.memory_space<smem>>
      %409 = vector.extract_strided_slice %397 {offsets = [0, 2], sizes = [16, 16], strides = [1, 1]} : vector<16x22xf32> to vector<16x16xf32>
      %410 = vector.broadcast %408 : f32 to vector<16x16xf32>
      %411 = arith.mulf %410, %409 : vector<16x16xf32>
      %412 = arith.addf %407, %411 : vector<16x16xf32>
      %c73 = arith.constant 73 : index
      %413 = memref.load %arg2[%c73] : memref<98xf32, #tpu.memory_space<smem>>
      %414 = vector.extract_strided_slice %397 {offsets = [0, 3], sizes = [16, 16], strides = [1, 1]} : vector<16x22xf32> to vector<16x16xf32>
      %415 = vector.broadcast %413 : f32 to vector<16x16xf32>
      %416 = arith.mulf %415, %414 : vector<16x16xf32>
      %417 = arith.addf %412, %416 : vector<16x16xf32>
      %c74 = arith.constant 74 : index
      %418 = memref.load %arg2[%c74] : memref<98xf32, #tpu.memory_space<smem>>
      %419 = vector.extract_strided_slice %397 {offsets = [0, 4], sizes = [16, 16], strides = [1, 1]} : vector<16x22xf32> to vector<16x16xf32>
      %420 = vector.broadcast %418 : f32 to vector<16x16xf32>
      %421 = arith.mulf %420, %419 : vector<16x16xf32>
      %422 = arith.addf %417, %421 : vector<16x16xf32>
      %c75 = arith.constant 75 : index
      %423 = memref.load %arg2[%c75] : memref<98xf32, #tpu.memory_space<smem>>
      %424 = vector.extract_strided_slice %397 {offsets = [0, 5], sizes = [16, 16], strides = [1, 1]} : vector<16x22xf32> to vector<16x16xf32>
      %425 = vector.broadcast %423 : f32 to vector<16x16xf32>
      %426 = arith.mulf %425, %424 : vector<16x16xf32>
      %427 = arith.addf %422, %426 : vector<16x16xf32>
      %c76 = arith.constant 76 : index
      %428 = memref.load %arg2[%c76] : memref<98xf32, #tpu.memory_space<smem>>
      %429 = vector.extract_strided_slice %397 {offsets = [0, 6], sizes = [16, 16], strides = [1, 1]} : vector<16x22xf32> to vector<16x16xf32>
      %430 = vector.broadcast %428 : f32 to vector<16x16xf32>
      %431 = arith.mulf %430, %429 : vector<16x16xf32>
      %432 = arith.addf %427, %431 : vector<16x16xf32>
      %c1_60 = arith.constant 1 : index
      %c4_61 = arith.constant 4 : index
      %c0_62 = arith.constant 0 : index
      %433 = vector.load %arg7[%c1_60, %c4_61, %c0_62] : memref<2x22x22xf32, #tpu.memory_space<vmem>>, vector<1x16x22xf32>
      %434 = vector.shape_cast %433 : vector<1x16x22xf32> to vector<16x22xf32>
      %c77 = arith.constant 77 : index
      %435 = memref.load %arg2[%c77] : memref<98xf32, #tpu.memory_space<smem>>
      %436 = vector.extract_strided_slice %434 {offsets = [0, 0], sizes = [16, 16], strides = [1, 1]} : vector<16x22xf32> to vector<16x16xf32>
      %437 = vector.broadcast %435 : f32 to vector<16x16xf32>
      %438 = arith.mulf %437, %436 : vector<16x16xf32>
      %439 = arith.addf %432, %438 : vector<16x16xf32>
      %c78 = arith.constant 78 : index
      %440 = memref.load %arg2[%c78] : memref<98xf32, #tpu.memory_space<smem>>
      %441 = vector.extract_strided_slice %434 {offsets = [0, 1], sizes = [16, 16], strides = [1, 1]} : vector<16x22xf32> to vector<16x16xf32>
      %442 = vector.broadcast %440 : f32 to vector<16x16xf32>
      %443 = arith.mulf %442, %441 : vector<16x16xf32>
      %444 = arith.addf %439, %443 : vector<16x16xf32>
      %c79 = arith.constant 79 : index
      %445 = memref.load %arg2[%c79] : memref<98xf32, #tpu.memory_space<smem>>
      %446 = vector.extract_strided_slice %434 {offsets = [0, 2], sizes = [16, 16], strides = [1, 1]} : vector<16x22xf32> to vector<16x16xf32>
      %447 = vector.broadcast %445 : f32 to vector<16x16xf32>
      %448 = arith.mulf %447, %446 : vector<16x16xf32>
      %449 = arith.addf %444, %448 : vector<16x16xf32>
      %c80 = arith.constant 80 : index
      %450 = memref.load %arg2[%c80] : memref<98xf32, #tpu.memory_space<smem>>
      %451 = vector.extract_strided_slice %434 {offsets = [0, 3], sizes = [16, 16], strides = [1, 1]} : vector<16x22xf32> to vector<16x16xf32>
      %452 = vector.broadcast %450 : f32 to vector<16x16xf32>
      %453 = arith.mulf %452, %451 : vector<16x16xf32>
      %454 = arith.addf %449, %453 : vector<16x16xf32>
      %c81 = arith.constant 81 : index
      %455 = memref.load %arg2[%c81] : memref<98xf32, #tpu.memory_space<smem>>
      %456 = vector.extract_strided_slice %434 {offsets = [0, 4], sizes = [16, 16], strides = [1, 1]} : vector<16x22xf32> to vector<16x16xf32>
      %457 = vector.broadcast %455 : f32 to vector<16x16xf32>
      %458 = arith.mulf %457, %456 : vector<16x16xf32>
      %459 = arith.addf %454, %458 : vector<16x16xf32>
      %c82 = arith.constant 82 : index
      %460 = memref.load %arg2[%c82] : memref<98xf32, #tpu.memory_space<smem>>
      %461 = vector.extract_strided_slice %434 {offsets = [0, 5], sizes = [16, 16], strides = [1, 1]} : vector<16x22xf32> to vector<16x16xf32>
      %462 = vector.broadcast %460 : f32 to vector<16x16xf32>
      %463 = arith.mulf %462, %461 : vector<16x16xf32>
      %464 = arith.addf %459, %463 : vector<16x16xf32>
      %c83 = arith.constant 83 : index
      %465 = memref.load %arg2[%c83] : memref<98xf32, #tpu.memory_space<smem>>
      %466 = vector.extract_strided_slice %434 {offsets = [0, 6], sizes = [16, 16], strides = [1, 1]} : vector<16x22xf32> to vector<16x16xf32>
      %467 = vector.broadcast %465 : f32 to vector<16x16xf32>
      %468 = arith.mulf %467, %466 : vector<16x16xf32>
      %469 = arith.addf %464, %468 : vector<16x16xf32>
      %c1_63 = arith.constant 1 : index
      %c5_64 = arith.constant 5 : index
      %c0_65 = arith.constant 0 : index
      %470 = vector.load %arg7[%c1_63, %c5_64, %c0_65] : memref<2x22x22xf32, #tpu.memory_space<vmem>>, vector<1x16x22xf32>
      %471 = vector.shape_cast %470 : vector<1x16x22xf32> to vector<16x22xf32>
      %c84 = arith.constant 84 : index
      %472 = memref.load %arg2[%c84] : memref<98xf32, #tpu.memory_space<smem>>
      %473 = vector.extract_strided_slice %471 {offsets = [0, 0], sizes = [16, 16], strides = [1, 1]} : vector<16x22xf32> to vector<16x16xf32>
      %474 = vector.broadcast %472 : f32 to vector<16x16xf32>
      %475 = arith.mulf %474, %473 : vector<16x16xf32>
      %476 = arith.addf %469, %475 : vector<16x16xf32>
      %c85 = arith.constant 85 : index
      %477 = memref.load %arg2[%c85] : memref<98xf32, #tpu.memory_space<smem>>
      %478 = vector.extract_strided_slice %471 {offsets = [0, 1], sizes = [16, 16], strides = [1, 1]} : vector<16x22xf32> to vector<16x16xf32>
      %479 = vector.broadcast %477 : f32 to vector<16x16xf32>
      %480 = arith.mulf %479, %478 : vector<16x16xf32>
      %481 = arith.addf %476, %480 : vector<16x16xf32>
      %c86 = arith.constant 86 : index
      %482 = memref.load %arg2[%c86] : memref<98xf32, #tpu.memory_space<smem>>
      %483 = vector.extract_strided_slice %471 {offsets = [0, 2], sizes = [16, 16], strides = [1, 1]} : vector<16x22xf32> to vector<16x16xf32>
      %484 = vector.broadcast %482 : f32 to vector<16x16xf32>
      %485 = arith.mulf %484, %483 : vector<16x16xf32>
      %486 = arith.addf %481, %485 : vector<16x16xf32>
      %c87 = arith.constant 87 : index
      %487 = memref.load %arg2[%c87] : memref<98xf32, #tpu.memory_space<smem>>
      %488 = vector.extract_strided_slice %471 {offsets = [0, 3], sizes = [16, 16], strides = [1, 1]} : vector<16x22xf32> to vector<16x16xf32>
      %489 = vector.broadcast %487 : f32 to vector<16x16xf32>
      %490 = arith.mulf %489, %488 : vector<16x16xf32>
      %491 = arith.addf %486, %490 : vector<16x16xf32>
      %c88 = arith.constant 88 : index
      %492 = memref.load %arg2[%c88] : memref<98xf32, #tpu.memory_space<smem>>
      %493 = vector.extract_strided_slice %471 {offsets = [0, 4], sizes = [16, 16], strides = [1, 1]} : vector<16x22xf32> to vector<16x16xf32>
      %494 = vector.broadcast %492 : f32 to vector<16x16xf32>
      %495 = arith.mulf %494, %493 : vector<16x16xf32>
      %496 = arith.addf %491, %495 : vector<16x16xf32>
      %c89 = arith.constant 89 : index
      %497 = memref.load %arg2[%c89] : memref<98xf32, #tpu.memory_space<smem>>
      %498 = vector.extract_strided_slice %471 {offsets = [0, 5], sizes = [16, 16], strides = [1, 1]} : vector<16x22xf32> to vector<16x16xf32>
      %499 = vector.broadcast %497 : f32 to vector<16x16xf32>
      %500 = arith.mulf %499, %498 : vector<16x16xf32>
      %501 = arith.addf %496, %500 : vector<16x16xf32>
      %c90 = arith.constant 90 : index
      %502 = memref.load %arg2[%c90] : memref<98xf32, #tpu.memory_space<smem>>
      %503 = vector.extract_strided_slice %471 {offsets = [0, 6], sizes = [16, 16], strides = [1, 1]} : vector<16x22xf32> to vector<16x16xf32>
      %504 = vector.broadcast %502 : f32 to vector<16x16xf32>
      %505 = arith.mulf %504, %503 : vector<16x16xf32>
      %506 = arith.addf %501, %505 : vector<16x16xf32>
      %c1_66 = arith.constant 1 : index
      %c6_67 = arith.constant 6 : index
      %c0_68 = arith.constant 0 : index
      %507 = vector.load %arg7[%c1_66, %c6_67, %c0_68] : memref<2x22x22xf32, #tpu.memory_space<vmem>>, vector<1x16x22xf32>
      %508 = vector.shape_cast %507 : vector<1x16x22xf32> to vector<16x22xf32>
      %c91 = arith.constant 91 : index
      %509 = memref.load %arg2[%c91] : memref<98xf32, #tpu.memory_space<smem>>
      %510 = vector.extract_strided_slice %508 {offsets = [0, 0], sizes = [16, 16], strides = [1, 1]} : vector<16x22xf32> to vector<16x16xf32>
      %511 = vector.broadcast %509 : f32 to vector<16x16xf32>
      %512 = arith.mulf %511, %510 : vector<16x16xf32>
      %513 = arith.addf %506, %512 : vector<16x16xf32>
      %c92 = arith.constant 92 : index
      %514 = memref.load %arg2[%c92] : memref<98xf32, #tpu.memory_space<smem>>
      %515 = vector.extract_strided_slice %508 {offsets = [0, 1], sizes = [16, 16], strides = [1, 1]} : vector<16x22xf32> to vector<16x16xf32>
      %516 = vector.broadcast %514 : f32 to vector<16x16xf32>
      %517 = arith.mulf %516, %515 : vector<16x16xf32>
      %518 = arith.addf %513, %517 : vector<16x16xf32>
      %c93 = arith.constant 93 : index
      %519 = memref.load %arg2[%c93] : memref<98xf32, #tpu.memory_space<smem>>
      %520 = vector.extract_strided_slice %508 {offsets = [0, 2], sizes = [16, 16], strides = [1, 1]} : vector<16x22xf32> to vector<16x16xf32>
      %521 = vector.broadcast %519 : f32 to vector<16x16xf32>
      %522 = arith.mulf %521, %520 : vector<16x16xf32>
      %523 = arith.addf %518, %522 : vector<16x16xf32>
      %c94 = arith.constant 94 : index
      %524 = memref.load %arg2[%c94] : memref<98xf32, #tpu.memory_space<smem>>
      %525 = vector.extract_strided_slice %508 {offsets = [0, 3], sizes = [16, 16], strides = [1, 1]} : vector<16x22xf32> to vector<16x16xf32>
      %526 = vector.broadcast %524 : f32 to vector<16x16xf32>
      %527 = arith.mulf %526, %525 : vector<16x16xf32>
      %528 = arith.addf %523, %527 : vector<16x16xf32>
      %c95 = arith.constant 95 : index
      %529 = memref.load %arg2[%c95] : memref<98xf32, #tpu.memory_space<smem>>
      %530 = vector.extract_strided_slice %508 {offsets = [0, 4], sizes = [16, 16], strides = [1, 1]} : vector<16x22xf32> to vector<16x16xf32>
      %531 = vector.broadcast %529 : f32 to vector<16x16xf32>
      %532 = arith.mulf %531, %530 : vector<16x16xf32>
      %533 = arith.addf %528, %532 : vector<16x16xf32>
      %c96 = arith.constant 96 : index
      %534 = memref.load %arg2[%c96] : memref<98xf32, #tpu.memory_space<smem>>
      %535 = vector.extract_strided_slice %508 {offsets = [0, 5], sizes = [16, 16], strides = [1, 1]} : vector<16x22xf32> to vector<16x16xf32>
      %536 = vector.broadcast %534 : f32 to vector<16x16xf32>
      %537 = arith.mulf %536, %535 : vector<16x16xf32>
      %538 = arith.addf %533, %537 : vector<16x16xf32>
      %c97 = arith.constant 97 : index
      %539 = memref.load %arg2[%c97] : memref<98xf32, #tpu.memory_space<smem>>
      %540 = vector.extract_strided_slice %508 {offsets = [0, 6], sizes = [16, 16], strides = [1, 1]} : vector<16x22xf32> to vector<16x16xf32>
      %541 = vector.broadcast %539 : f32 to vector<16x16xf32>
      %542 = arith.mulf %541, %540 : vector<16x16xf32>
      %543 = arith.addf %538, %542 : vector<16x16xf32>
      %c0_69 = arith.constant 0 : index
      %544 = memref.load %arg3[%c0_69] : memref<1xf32, #tpu.memory_space<smem>>
      %545 = vector.broadcast %544 : f32 to vector<16x16xf32>
      %546 = arith.addf %543, %545 : vector<16x16xf32>
      %547 = arith.negf %546 : vector<16x16xf32>
      %548 = math.exp %547 : vector<16x16xf32>
      %cst_70 = arith.constant 1.000000e+00 : f32
      %549 = vector.broadcast %cst_70 : f32 to vector<16x16xf32>
      %550 = arith.addf %549, %548 : vector<16x16xf32>
      %551 = arith.divf %549, %550 : vector<16x16xf32>
      %552 = arith.mulf %551, %546 : vector<16x16xf32>
      %c0_71 = arith.constant 0 : index
      %c0_72 = arith.constant 0 : index
      %c0_73 = arith.constant 0 : index
      %c0_74 = arith.constant 0 : index
      %553 = vector.load %arg5[%c0_71, %c0_72, %c0_73, %c0_74] : memref<1x1x16x16xf32, #tpu.memory_space<vmem>>, vector<1x1x16x16xf32>
      %554 = vector.shape_cast %553 : vector<1x1x16x16xf32> to vector<16x16xf32>
      %555 = vector.shape_cast %552 : vector<16x16xf32> to vector<1x1x16x16xf32>
      tpu.vector_store %arg5[%c0_71, %c0_72, %c0_73, %c0_74], %555 {strides = array<i32>} : memref<1x1x16x16xf32, #tpu.memory_space<vmem>>, vector<1x1x16x16xf32>,
    } else {
    }
    return
  }
  func.func @transform_0(%arg0: i32, %arg1: i32) -> i32 {
    %c0_i32 = arith.constant 0 : i32
    %c0_i32_0 = arith.constant 0 : i32
    return %c0_i32 : i32
  }
  func.func @transform_1(%arg0: i32, %arg1: i32) -> i32 {
    %c0_i32 = arith.constant 0 : i32
    %c0_i32_0 = arith.constant 0 : i32
    return %c0_i32 : i32
  }
  func.func @transform_2(%arg0: i32, %arg1: i32) -> (i32, i32, i32, i32) {
    %c0_i32 = arith.constant 0 : i32
    %c0_i32_0 = arith.constant 0 : i32
    %c0_i32_1 = arith.constant 0 : i32
    return %arg0, %arg1, %c0_i32, %c0_i32_0 : i32, i32, i32, i32
  }
  func.func @transform_3(%arg0: i32, %arg1: i32) -> (i32, i32, i32, i32) {
    %c0_i32 = arith.constant 0 : i32
    %c0_i32_0 = arith.constant 0 : i32
    %c0_i32_1 = arith.constant 0 : i32
    %c0_i32_2 = arith.constant 0 : i32
    return %arg0, %c0_i32, %c0_i32_0, %c0_i32_1 : i32, i32, i32, i32
  }
}

</mosaic_0001>

<bundles_post_ra>
// kernel: tpu_custom_call.1
= control target key start
LH: loop header
LB: loop body
LE: loop exit
PB: predicated region body
PF: predicated region fallthrough
CT: control target
= control target key end

     0   :  { %s2963_s0 = inlined_call_operand.vmem [shape: f32[98], index: 0, kind: input, shape index: {}]   ;;  %s2964_s1 = inlined_call_operand.<no memory space> [shape: f32[1], index: 1, kind: input, shape index: {}]   ;;  %s2965_s2 = inlined_call_operand.hbm [shape: f32[2,4,16,16], index: 2, kind: input, shape index: {}]   ;;  %s2966_s3 = inlined_call_operand.hbm [shape: f32[2,1,16,16], index: 3, kind: output, shape index: {}]  }
   0x1   :  { %8 = sst [smem:[#allocation4]] %s2964_s1 }
   0x2   :  { %9 = vsyncpa [#allocation8], 0 }
   0x3   :  { %10 = vsyncpa [#allocation6], 0 }
   0x4   :  { %12 = vsyncpa [#allocation6 + $0x1], 0 }
   0x5   :  { %13 = vsyncpa [#allocation7], 0 }
   0x6   :  { %15 = vsyncpa [#allocation7 + $0x1], 0  ;;  %s2151_s14 = smov 0   ;;  %s2153_s15 = smov 0  }
   0x7   :  { %s2155_s16 = smov 0   ;;  %s2157_s17 = smov 0  }
   0x8   :  { %s2159_s18 = smov 0   ;;  %s2161_s19 = smov 0  }
   0x9 LB: > { %s1771_s1 = sadd.s32 4294967295, %s2113_s19   ;;  %s1772_s20 = sadd.s32 4294967294, %s2113_s19   ;;  %s2113_s19 = sphi %s2161_s19, %s21_s19   ;;  %s2109_s18 = sphi %s2159_s18, %s2978_s18   ;;  %s2105_s17 = sphi %s2157_s17, %s2977_s17   ;;  %s2101_s16 = sphi %s2155_s16, %s2976_s16   ;;  %s2097_s15 = sphi %s2153_s15, %s2975_s15   ;;  %s2093_s14 = sphi %s2151_s14, %s2974_s14  }
   0xa   : > { %s84_s21 = sadd.s32 1, %s2101_s16  ;;  %p91_p0 = scmp.ne.s32.totalorder %s2101_s16, %s2097_s15 }
   0xb   : > { %p92_p1 = scmp.eq.s32.totalorder %s2113_s19, 0  ;;  %p97_p2 = scmp.ne.s32.totalorder %s2097_s15, %s2093_s14 }
   0xc   : > { %p2189_p3 = scmp.eq.s32.totalorder %s1771_s1, 0  ;;  %p121_p4 = scmp.eq.s32.totalorder %s1771_s1, 1 }
   0xd   : > { %p2193_p5 = por %p92_p1, %p91_p0  ;;  %p127_p6 = scmp.eq.s32.totalorder %s1772_s20, 1 }
   0xe   : > { %p2199_p7 = por %p2189_p3, %p97_p2  ;;  %p2203_p8 = por %p121_p4, %p91_p0 }
   0xf   : > { %p2207_p9 = por %p127_p6, %p97_p2  ;;  %p1773_p10 = scmp.ge.s32.totalorder %s2113_s19, 1 }
  0x10   : > { %p134_p11 = scmp.lt.s32.totalorder %s2113_s19, 3  ;;  %s146_s29 = sshll.u32 %s2963_s0, 4  ;;  %s147_s29 = int_to_ptr.vmem [resolvable:$true] %s146_s29 }
  0x11   : > { %p1775_p13 = scmp.ge.s32.totalorder %s2113_s19, 2  ;;  %p1910_p0 = scmp.lt.s32.totalorder %s2113_s19, 2 }
  0x12   : > { %p2216_p12 = pnand %p1773_p10, %p134_p11  ;;  %s33_s5 = sadd.s32 1, %s2109_s18 }
  0x13   : > { %p2226_p2 = pnand %p1910_p0, %p2193_p5  ;;  %p35_p6 = scmp.ge.s32.totalorder %s33_s5, 2 }
  0x14   : > { %p1897_p1 = pneg %p2216_p12  ;;  %s160_s6 = sand.u32 1, %s2101_s16  }
  0x15   : > { %s2115_s7 = smov [#allocation5]   ;;  %s2980_s5 = smov (%p35_p6, %s33_s5), 0 }
  0x16   : > { %p1898_p4 = pnand %p1897_p1, %p2189_p3  ;;  %s1776_s8 = sshll.u32 %s160_s6, 6 }
  0x17   : > { %s79_s9 = ssub.s32 %s2109_s18, %s2980_s5  ;;  %s1887_s10 = sshll.u32 %s2109_s18, 6 }
  0x18   : > { %1900 = dma.vmem_to_smem (!%p1898_p4), %s147_s29, 16, %s2115_s7, [#allocation8]  }
  0x19   : > { %p82_p10 = scmp.eq.s32.totalorder %s79_s9, 0  ;;  %s172_s13 = scalar_lea.hbm %s2965_s2, %s1887_s10 }
  0x1a   : > { %s164_s1 = scalar_lea.vmem [#allocation9], %s1776_s8  ;;  %s173_s27 = sshll.u32 %s172_s13, 4  ;;  %s174_s27 = int_to_ptr.hbm [resolvable:$true] %s173_s27 }
  0x1b   : > { %s175_s20 = sshll.u32 %s164_s1, 4  ;;  %s161_s28 = scalar_lea.sflag [#allocation6], %s160_s6  ;;  %s176_s20 = int_to_ptr.vmem [resolvable:$true] %s175_s20 }
  0x1c   : > { %s2245_s23 = scalar_select %p82_p10, %s2101_s16, %s84_s21  }
  0x1d   : > { %s2116_s29 = smov 128   ;;  %s2117_s7 = smov 8  }
  0x1e   : > { %1904 = dma.hbm_to_vmem [thread:$0]  (!%p2226_p2), %s174_s27, 1024, %s176_s20, %s161_s28, %s2116_s29, %s2116_s29, %s2117_s7  }
  0x1f   : > { %187 = sbr.rel (%p2216_p12) target bundleno = 779 (0x30b), region = 32 }
  0x24   : > { %2080 = dma.done.wait (%p2189_p3), [#allocation8], 16  }
  0x25   : > { %2082 = vsyncadd (%p2189_p3), [#allocation8], 4294967280  ;;  %s2256_s21 = sand.u32 1, %s2097_s15  }
  0x26   : > { %s1781_s6 = sshll.u32 %s2256_s21, 6  ;;  %s195_s8 = scalar_lea.sflag [#allocation6], %s2256_s21 }
  0x27   : > { %s198_s9 = scalar_lea.vmem [#allocation9], %s1781_s6 }
  0x28   : > { %2084 = dma.done.wait (%p2199_p7), %s195_s8, 1024  }
  0x29   : > { %2086 = vsyncadd (%p2199_p7), %s195_s8, 4294966272 }
  0x2a   : > { %204 = sfence }
  0x2b   : > { %v224_v0 = vld [vmem:[%s198_s9] sm:$0xff]  ;;  %v226_v1 = vld [vmem:[%s198_s9 + $0x10] sm:$0xff]  ;;  %vm232_vm0 = vcmask 130048   ;;  %vm290_vm1 = vcmask 179200   ;;  %v225_v7 = vld [vmem:[%s198_s9 + $0x8] sm:$0xff]  ;;  %v2118_v27 = vmov 0.0  }
  0x2c   : > { %v228_v2 = vld [vmem:[%s198_s9 + $0x20] sm:$0xff]  ;;  %v230_v3 = vld [vmem:[%s198_s9 + $0x30] sm:$0xff]  ;;  %v233_v4 = vsel %vm232_vm0, %v224_v0, 0.0  ;;  %v234_v5 = vsel %vm232_vm0, %v226_v1, 0.0  ;;  %v227_v8 = vld [vmem:[%s198_s9 + $0x18] sm:$0xff]  ;;  %v240_v13 = vsel %vm232_vm0, %v225_v7, 0.0 }
  0x2d   : > { %v236_v6 = vsel %vm232_vm0, %v228_v2, 0.0  ;;  %v235_v9 = vadd.f32 %v234_v5, %v233_v4  ;;  %v238_v10 = vsel %vm232_vm0, %v230_v3, 0.0  ;;  %v229_v11 = vld [vmem:[%s198_s9 + $0x28] sm:$0xff]  ;;  %v231_v12 = vld [vmem:[%s198_s9 + $0x38] sm:$0xff]  ;;  %v241_v14 = vsel %vm232_vm0, %v227_v8, 0.0  ;;  %291 = vst.msk [vmem:[#allocation3] sm:$0xff] %vm290_vm1, %v2118_v27 }
  0x2e   : > { %v242_v15 = vadd.f32 %v241_v14, %v240_v13  ;;  %v243_v16 = vsel %vm232_vm0, %v229_v11, 0.0  ;;  %v245_v17 = vsel %vm232_vm0, %v231_v12, 0.0  ;;  %v247_v18 = vsel %vm232_vm0, %v224_v0, -inf  ;;  %292 = vst.msk [vmem:[#allocation3 + $0x8] sm:$0xff] %vm290_vm1, %v2118_v27  ;;  %s2119_s22 = smov 3   ;;  %s1784_s24 = sld [smem:[#allocation5 + $0x2]] }
  0x2f   : > { %v237_v19 = vadd.f32 %v236_v6, %v235_v9  ;;  %v248_v20 = vsel %vm232_vm0, %v226_v1, -inf  ;;  %v249_v21 = vsel %vm232_vm0, %v228_v2, -inf  ;;  %v251_v22 = vsel %vm232_vm0, %v230_v3, -inf  ;;  %295 = vst.msk [vmem:[#allocation3 + $0x18] sm:$0xff] %vm290_vm1, %v2118_v27  ;;  %s1783_s30 = sld [smem:[#allocation5 + $0x1]]  ;;  %s2120_s10 = smov 126  }
  0x30   : > { %v244_v23 = vadd.f32 %v243_v16, %v242_v15  ;;  %v250_v24 = vmax.f32 %v247_v18, %v249_v21  ;;  %v252_v25 = vmax.f32 %v248_v20, %v251_v22  ;;  %296 = vst.msk [vmem:[#allocation3 + $0x20] sm:$0xff] %vm290_vm1, %v2118_v27  ;;  %v254_v33 = vsel %vm232_vm0, %v225_v7, -inf  ;;  %s1785_s4 = sld [smem:[#allocation5 + $0x3]]  ;;  %s2121_s11 = smov 127  }
  0x31   : > { %v239_v26 = vadd.f32 %v238_v10, %v237_v19  ;;  %v255_v34 = vsel %vm232_vm0, %v227_v8, -inf  ;;  %v256_v35 = vsel %vm232_vm0, %v229_v11, -inf  ;;  %v258_v36 = vsel %vm232_vm0, %v231_v12, -inf  ;;  %s1787_s12 = sld [smem:[#allocation5 + $0x5]]  ;;  %s2122_s1 = smov 125  }
  0x32   : > { %v246_v28 = vadd.f32 %v245_v17, %v244_v23  ;;  %v253_v29 = vmax.f32 %v250_v24, %v252_v25  ;;  %v257_v37 = vmax.f32 %v254_v33, %v256_v35  ;;  %v259_v38 = vmax.f32 %v255_v34, %v258_v36  ;;  %s1786_s13 = sld [smem:[#allocation5 + $0x4]]  ;;  %s2123_s27 = smov 123  }
  0x33   : > { %265 = vst.msk [vmem:[#allocation2] sm:$0xff] %vm232_vm0, %v239_v26  ;;  %vm293_vm2 = vcmask 177152   ;;  %vm308_vm3 = vcmask 154648   ;;  %s1788_s20 = sld [smem:[#allocation5 + $0x6]]  ;;  %s2124_s28 = smov 124  }
  0x34   : > { %266 = vst.msk [vmem:[#allocation2 + $0x8] sm:$0xff] %vm232_vm0, %v246_v28  ;;  %v260_v39 = vmax.f32 %v257_v37, %v259_v38  ;;  %v348_v42 = vstv %s1784_s24  ;;  %s1791_s29 = sld [smem:[#allocation5 + $0x9]]  ;;  %s2125_s6 = smov 122  }
  0x35   : > { %268 = vst.msk [vmem:[#allocation2 + $0x10] sm:$0xff] %vm232_vm0, %v253_v29  ;;  %v334_v43 = vstv %s1783_s30  ;;  %s1790_s7 = sld [smem:[#allocation5 + $0x8]] }
  0x36   : > { %269 = vst.msk [vmem:[#allocation2 + $0x18] sm:$0xff] %vm232_vm0, %v260_v39  ;;  %v362_v50 = vstv %s1785_s4  ;;  %s1792_s8 = sld [smem:[#allocation5 + $0xa]] }
  0x37   : > { %294 = vst.msk [vmem:[#allocation3 + $0x10] sm:$0x3f] %vm293_vm2, %v2118_v27  ;;  %v390_v53 = vstv %s1787_s12  ;;  %s1794_s9 = sld [smem:[#allocation5 + $0xc]] }
  0x38   : > { %297 = vst.msk [vmem:[#allocation3 + $0x28] sm:$0x3f] %vm293_vm2, %v2118_v27  ;;  %v376_v54 = vstv %s1786_s13  ;;  %s1795_s24 = sld [smem:[#allocation5 + $0xd]] }
  0x39   : > { %v404_v58 = vstv %s1788_s20  ;;  %s1798_s30 = sld [smem:[#allocation5 + $0x10]] }
  0x3a   : > { %v298_v30 = vld [vmem:[#allocation2] sm:$0xff]  ;;  %v440_v63 = vstv %s1791_s29  ;;  %s1797_s4 = sld [smem:[#allocation5 + $0xf]] }
  0x3b   : > { %302 = vrot.lane.b32.xlu0 %v298_v30, %s2119_s22  ;;  %v299_v32 = vld [vmem:[#allocation2 + $0x8] sm:$0xff]  ;;  %v426_v0 = vstv %s1790_s7  ;;  %s1799_s12 = sld [smem:[#allocation5 + $0x11]] }
  0x3c   : > { %v312_v31 = vld [vmem:[#allocation2 + $0x10] sm:$0xff]  ;;  %v454_v5 = vstv %s1792_s8  ;;  %s1801_s13 = sld [smem:[#allocation5 + $0x13]] }
  0x3d   : > { %316 = vrot.lane.b32.xlu1 %v312_v31, %s2119_s22  ;;  %v313_v40 = vld [vmem:[#allocation2 + $0x18] sm:$0xff]  ;;  %v482_v9 = vstv %s1794_s9  ;;  %s1800_s20 = sld [smem:[#allocation5 + $0x12]] }
  0x3e   : > { %v496_v14 = vstv %s1795_s24  ;;  %s1802_s29 = sld [smem:[#allocation5 + $0x14]] }
  0x3f   : > { %v532_v19 = vstv %s1798_s30  ;;  %s1805_s7 = sld [smem:[#allocation5 + $0x17]] }
  0x40   : > { %v518_v20 = vstv %s1797_s4  ;;  %s1804_s8 = sld [smem:[#allocation5 + $0x16]] }
  0x41   : > { %v546_v26 = vstv %s1799_s12  ;;  %s1806_s9 = sld [smem:[#allocation5 + $0x18]] }
  0x42   : > { %v574_v31 = vstv %s1801_s13  ;;  %s1807_s24 = sld [smem:[#allocation5 + $0x19]] }
  0x43   : > { %304 = vrot.lane.b32.xlu0 %v299_v32, %s2119_s22  ;;  %v560_v32 = vstv %s1800_s20  ;;  %s2390_s30 = sld [smem:[#allocation5 + $0x1b]] }
  0x44   : > { %v588_v36 = vstv %s1802_s29  ;;  %s327_s4 = sld [smem:[#allocation5]] }
  0x45   : > { %318 = vrot.lane.b32.xlu1 %v313_v40, %s2119_s22  ;;  %s1793_s22 = sld [smem:[#allocation5 + $0xb]] }
  0x46   : > { %s2398_s12 = sld [smem:[#allocation5 + $0x1e]] }
  0x47   : > { %s2400_s13 = sld [smem:[#allocation5 + $0x1d]] }
  0x48   : > { %s2414_s20 = sld [smem:[#allocation5 + $0x1f]] }
  0x49   : > { %s2416_s29 = sld [smem:[#allocation5 + $0x7]] }
  0x4b   : > { %v468_v10 = vstv %s1793_s22  ;;  %s1808_s22 = sld [smem:[#allocation5 + $0x1a]] }
  0xad   : > { %v303_v41 = vpop.permute.xlu0 %302 }
  0xae   : > { %309 = vst.msk [vmem:[#allocation3 + $0x3] sm:$0xff] %vm308_vm3, %v303_v41 }
  0xaf   : > { %v317_v24 = vpop.permute.xlu1 %316 }
  0xb0   : > { %323 = vst.msk [vmem:[#allocation3 + $0x1b] sm:$0xff] %vm308_vm3, %v317_v24 }
  0xb5   : > { %v2289_v44 = vld [vmem:[#allocation3] sm:$0xff]  ;;  %v305_v45 = vpop.permute.xlu0 %304 }
  0xb6   : > { %310 = vst.msk [vmem:[#allocation3 + $0xb] sm:$0xff] %vm308_vm3, %v305_v45  ;;  %v349_v46 = vmul.f32 %v348_v42, %v2289_v44  ;;  %v335_v47 = vmul.f32 %v334_v43, %v2289_v44  ;;  %v391_v55 = vmul.f32 %v390_v53, %v2289_v44  ;;  %v377_v56 = vmul.f32 %v376_v54, %v2289_v44  ;;  %v2316_v62 = vld [vmem:[#allocation3 + $0x1] sm:$0xff] }
  0xb7   : > { %v363_v57 = vmul.f32 %v362_v50, %v2289_v44  ;;  %v441_v1 = vmul.f32 %v440_v63, %v2316_v62  ;;  %v427_v2 = vmul.f32 %v426_v0, %v2316_v62  ;;  %v405_v3 = vmul.f32 %v404_v58, %v2289_v44  ;;  %v2344_v18 = vld [vmem:[#allocation3 + $0x2] sm:$0xff]  ;;  %v319_v30 = vpop.permute.xlu1 %318 }
  0xb8   : > { %353 = vrot.lane.b32.xlu0 %v349_v46, %s2120_s10  ;;  %339 = vrot.lane.b32.xlu2 %v335_v47, %s2121_s11  ;;  %v483_v11 = vmul.f32 %v482_v9, %v2316_v62  ;;  %v469_v12 = vmul.f32 %v468_v10, %v2316_v62  ;;  %v455_v13 = vmul.f32 %v454_v5, %v2316_v62  ;;  %v2374_v41 = vld [vmem:[#allocation3 + $0x3] sm:$0xff] }
  0xb9   : > { %v533_v21 = vmul.f32 %v532_v19, %v2344_v18  ;;  %v519_v22 = vmul.f32 %v518_v20, %v2344_v18  ;;  %v497_v23 = vmul.f32 %v496_v14, %v2316_v62  ;;  %324 = vst.msk [vmem:[#allocation3 + $0x23] sm:$0xff] %vm308_vm3, %v319_v30  ;;  %v575_v33 = vmul.f32 %v574_v31, %v2344_v18 }
  0xba   : > { %v561_v34 = vmul.f32 %v560_v32, %v2344_v18  ;;  %v547_v35 = vmul.f32 %v546_v26, %v2344_v18  ;;  %v589_v47 = vmul.f32 %v588_v36, %v2344_v18 }
  0xbd   : > { %v2296_v48 = vld [vmem:[#allocation3 + $0x8] sm:$0xff] }
  0xbe   : > { %v336_v49 = vmul.f32 %v334_v43, %v2296_v48  ;;  %v364_v51 = vmul.f32 %v362_v50, %v2296_v48  ;;  %v350_v52 = vmul.f32 %v348_v42, %v2296_v48  ;;  %v406_v59 = vmul.f32 %v404_v58, %v2296_v48  ;;  %v2324_v4 = vld [vmem:[#allocation3 + $0x9] sm:$0xff] }
  0xbf   : > { %v392_v60 = vmul.f32 %v390_v53, %v2296_v48  ;;  %v378_v61 = vmul.f32 %v376_v54, %v2296_v48  ;;  %v456_v6 = vmul.f32 %v454_v5, %v2324_v4  ;;  %v442_v7 = vmul.f32 %v440_v63, %v2324_v4  ;;  %v2353_v25 = vld [vmem:[#allocation3 + $0xa] sm:$0xff] }
  0xc0   : > { %369 = vrot.lane.b32.xlu0 %v364_v51, %s2122_s1  ;;  %355 = vrot.lane.b32.xlu1 %v350_v52, %s2120_s10  ;;  %v428_v8 = vmul.f32 %v426_v0, %v2324_v4  ;;  %v498_v15 = vmul.f32 %v496_v14, %v2324_v4  ;;  %v484_v16 = vmul.f32 %v482_v9, %v2324_v4  ;;  %v624_v42 = vstv %s1805_s7  ;;  %s2425_s7 = sld [smem:[#allocation5 + $0x21]] }
  0xc1   : > { %341 = vrot.lane.b32.xlu2 %v336_v49, %s2121_s11  ;;  %v470_v17 = vmul.f32 %v468_v10, %v2324_v4  ;;  %v548_v27 = vmul.f32 %v546_v26, %v2353_v25  ;;  %v534_v28 = vmul.f32 %v532_v19, %v2353_v25  ;;  %v520_v29 = vmul.f32 %v518_v20, %v2353_v25  ;;  %v2382_v49 = vld [vmem:[#allocation3 + $0xb] sm:$0xff] }
  0xc2   : > { %v590_v37 = vmul.f32 %v588_v36, %v2353_v25  ;;  %v576_v38 = vmul.f32 %v574_v31, %v2353_v25  ;;  %v562_v39 = vmul.f32 %v560_v32, %v2353_v25  ;;  %v610_v43 = vstv %s1804_s8  ;;  %v2427_v26 = vld [vmem:[#allocation3 + $0xc] sm:$0xff]  ;;  %s2430_s8 = sld [smem:[#allocation5 + $0x20]] }
  0xc3   : > { %v625_v45 = vmul.f32 %v624_v42, %v2374_v41  ;;  %v611_v46 = vmul.f32 %v610_v43, %v2374_v41  ;;  %v638_v51 = vstv %s1806_s9  ;;  %v626_v53 = vmul.f32 %v624_v42, %v2382_v49  ;;  %s2442_s9 = sld [smem:[#allocation5 + $0x22]] }
  0xc4   : > { %v640_v52 = vmul.f32 %v638_v51, %v2382_v49  ;;  %v612_v54 = vmul.f32 %v610_v43, %v2382_v49  ;;  %v680_v0 = vstv %s2390_s30  ;;  %s2466_s30 = sld [smem:[#allocation5 + $0x26]] }
  0xc5   : > { %v681_v19 = vmul.f32 %v680_v0, %v2374_v41 }
  0xc6   : > { %v758_v43 = vstv %s2425_s7  ;;  %s2505_s7 = sld [smem:[#allocation5 + $0x2b]] }
  0xc8   : > { %395 = vrot.lane.b32.xlu0 %v391_v55, %s2123_s27  ;;  %381 = vrot.lane.b32.xlu1 %v377_v56, %s2124_s28  ;;  %v666_v56 = vstv %s1808_s22  ;;  %s2451_s22 = sld [smem:[#allocation5 + $0x25]] }
  0xc9   : > { %367 = vrot.lane.b32.xlu2 %v363_v57, %s2122_s1  ;;  %v652_v57 = vstv %s1807_s24  ;;  %v667_v58 = vmul.f32 %v666_v56, %v2374_v41  ;;  %s2454_s24 = sld [smem:[#allocation5 + $0x24]] }
  0xca   : > { %v654_v5 = vmul.f32 %v652_v57, %v2382_v49 }
  0xd0   : > { %411 = vrot.lane.b32.xlu0 %v406_v59, %s2125_s6  ;;  %397 = vrot.lane.b32.xlu1 %v392_v60, %s2123_s27  ;;  %v653_v59 = vmul.f32 %v652_v57, %v2374_v41  ;;  %v639_v60 = vmul.f32 %v638_v51, %v2374_v41  ;;  %v760_v57 = vmul.f32 %v758_v43, %v2427_v26 }
  0xd1   : > { %383 = vrot.lane.b32.xlu2 %v378_v61, %s2124_s28 }
  0xd8   : > { %445 = vrot.lane.b32.xlu0 %v441_v1, %s2120_s10  ;;  %431 = vrot.lane.b32.xlu1 %v427_v2, %s2121_s11  ;;  %v328_v1 = vstv %s327_s4  ;;  %v682_v2 = vmul.f32 %v680_v0, %v2382_v49  ;;  %v2462_v0 = vld [vmem:[#allocation3 + $0x5] sm:$0xff]  ;;  %s2468_s4 = sld [smem:[#allocation5 + $0xe]] }
  0xd9   : > { %409 = vrot.lane.b32.xlu2 %v405_v3, %s2125_s6  ;;  %v668_v3 = vmul.f32 %v666_v56, %v2382_v49  ;;  %v330_v14 = vmul.f32 %v328_v1, %v2296_v48 }
  0xe0   : > { %461 = vrot.lane.b32.xlu0 %v456_v6, %s2122_s1  ;;  %447 = vrot.lane.b32.xlu1 %v442_v7, %s2120_s10  ;;  %v329_v6 = vmul.f32 %v328_v1, %v2289_v44  ;;  %v808_v1 = vstv %s2451_s22  ;;  %s2527_s22 = sld [smem:[#allocation5 + $0x2f]] }
  0xe1   : > { %433 = vrot.lane.b32.xlu2 %v428_v8, %s2121_s11 }
  0xe8   : > { %487 = vrot.lane.b32.xlu0 %v483_v11, %s2123_s27  ;;  %473 = vrot.lane.b32.xlu1 %v469_v12, %s2124_s28  ;;  %v2410_v11 = vld [vmem:[#allocation3 + $0x4] sm:$0xff]  ;;  %v716_v12 = vstv %s2398_s12  ;;  %s2476_s12 = sld [smem:[#allocation5 + $0x28]] }
  0xe9   : > { %459 = vrot.lane.b32.xlu2 %v455_v13, %s2122_s1  ;;  %v702_v13 = vstv %s2400_s13  ;;  %v717_v44 = vmul.f32 %v716_v12, %v2410_v11  ;;  %v718_v32 = vmul.f32 %v716_v12, %v2427_v26  ;;  %s2481_s13 = sld [smem:[#allocation5 + $0x27]] }
  0xf0   : > { %503 = vrot.lane.b32.xlu0 %v498_v15, %s2125_s6  ;;  %489 = vrot.lane.b32.xlu1 %v484_v16, %s2123_s27  ;;  %v703_v16 = vmul.f32 %v702_v13, %v2410_v11 }
  0xf1   : > { %475 = vrot.lane.b32.xlu2 %v470_v17, %s2124_s28 }
  0xf8   : > { %537 = vrot.lane.b32.xlu0 %v533_v21, %s2120_s10  ;;  %523 = vrot.lane.b32.xlu1 %v519_v22, %s2121_s11 }
  0xf9   : > { %501 = vrot.lane.b32.xlu2 %v497_v23, %s2125_s6 }
 0x100   : > { %553 = vrot.lane.b32.xlu0 %v548_v27, %s2122_s1  ;;  %539 = vrot.lane.b32.xlu1 %v534_v28, %s2120_s10  ;;  %v730_v27 = vstv %s2414_s20  ;;  %v420_v28 = vstv %s2416_s29  ;;  %s2493_s20 = sld [smem:[#allocation5 + $0x29]] }
 0x101   : > { %525 = vrot.lane.b32.xlu2 %v520_v29, %s2121_s11  ;;  %v732_v31 = vmul.f32 %v730_v27, %v2427_v26  ;;  %s2502_s29 = sld [smem:[#allocation5 + $0x2c]] }
 0x108   : > { %579 = vrot.lane.b32.xlu0 %v575_v33, %s2123_s27  ;;  %565 = vrot.lane.b32.xlu1 %v561_v34, %s2124_s28  ;;  %v421_v33 = vmul.f32 %v420_v28, %v2316_v62  ;;  %v422_v62 = vmul.f32 %v420_v28, %v2324_v4 }
 0x109   : > { %551 = vrot.lane.b32.xlu2 %v547_v35, %s2122_s1  ;;  %v704_v35 = vmul.f32 %v702_v13, %v2427_v26 }
 0x110   : > { %595 = vrot.lane.b32.xlu0 %v590_v37, %s2125_s6  ;;  %581 = vrot.lane.b32.xlu1 %v576_v38, %s2123_s27 }
 0x111   : > { %567 = vrot.lane.b32.xlu2 %v562_v39, %s2124_s28 }
 0x112   : > { %v340_v40 = vpop.permute.xlu2 %339 }
 0x113   : > { %v345_v9 = vadd.f32 %v340_v40, %v329_v6 }
 0x118   : > { %629 = vrot.lane.b32.xlu0 %v625_v45, %s2120_s10  ;;  %615 = vrot.lane.b32.xlu1 %v611_v46, %s2121_s11  ;;  %v744_v45 = vstv %s2430_s8  ;;  %s2517_s8 = sld [smem:[#allocation5 + $0x2d]] }
 0x119   : > { %593 = vrot.lane.b32.xlu2 %v589_v47, %s2125_s6  ;;  %v759_v47 = vmul.f32 %v758_v43, %v2410_v11 }
 0x11b   : > { %v342_v50 = vpop.permute.xlu2 %341 }
 0x11c   : > { %v346_v17 = vadd.f32 %v342_v50, %v330_v14  ;;  %v745_v50 = vmul.f32 %v744_v45, %v2410_v11 }
 0x120   : > { %645 = vrot.lane.b32.xlu0 %v640_v52, %s2122_s1  ;;  %631 = vrot.lane.b32.xlu1 %v626_v53, %s2120_s10  ;;  %v731_v52 = vmul.f32 %v730_v27, %v2410_v11 }
 0x121   : > { %617 = vrot.lane.b32.xlu2 %v612_v54, %s2121_s11 }
 0x123   : > { %v368_v55 = vpop.permute.xlu2 %367 }
 0x128   : > { %671 = vrot.lane.b32.xlu0 %v667_v58, %s2123_s27  ;;  %657 = vrot.lane.b32.xlu1 %v653_v59, %s2124_s28  ;;  %v746_v58 = vmul.f32 %v744_v45, %v2427_v26 }
 0x129   : > { %643 = vrot.lane.b32.xlu2 %v639_v60, %s2122_s1 }
 0x12a   : > { %v354_v61 = vpop.permute.xlu0 %353 }
 0x12b   : > { %v384_v63 = vpop.permute.xlu2 %383  ;;  %v359_v15 = vadd.f32 %v354_v61, %v345_v9 }
 0x12d   : > { %v373_v20 = vadd.f32 %v368_v55, %v359_v15  ;;  %v772_v55 = vstv %s2442_s9  ;;  %s2519_s9 = sld [smem:[#allocation5 + $0x15]] }
 0x12e   : > { %v774_v56 = vmul.f32 %v772_v55, %v2427_v26 }
 0x130   : > { %687 = vrot.lane.b32.xlu0 %v682_v2, %s2125_s6  ;;  %673 = vrot.lane.b32.xlu1 %v668_v3, %s2123_s27  ;;  %v794_v2 = vstv %s2454_s24  ;;  %s2532_s24 = sld [smem:[#allocation5 + $0x2e]] }
 0x131   : > { %659 = vrot.lane.b32.xlu2 %v654_v5, %s2124_s28  ;;  %v809_v5 = vmul.f32 %v808_v1, %v2462_v0  ;;  %v795_v6 = vmul.f32 %v794_v2, %v2462_v0 }
 0x132   : > { %v356_v7 = vpop.permute.xlu1 %355  ;;  %v370_v8 = vpop.permute.xlu0 %369 }
 0x133   : > { %v410_v10 = vpop.permute.xlu2 %409  ;;  %v360_v21 = vadd.f32 %v356_v7, %v346_v17  ;;  %v512_v17 = vstv %s2468_s4  ;;  %s2553_s4 = sld [smem:[#allocation5 + $0x33]] }
 0x135   : > { %v374_v29 = vadd.f32 %v370_v8, %v360_v21  ;;  %v773_v8 = vmul.f32 %v772_v55, %v2410_v11 }
 0x137   : > { %v388_v36 = vadd.f32 %v384_v63, %v374_v29 }
 0x138   : > { %721 = vrot.lane.b32.xlu0 %v717_v44, %s2120_s10  ;;  %707 = vrot.lane.b32.xlu1 %v703_v16, %s2121_s11  ;;  %v2478_v44 = vld [vmem:[#allocation3 + $0xd] sm:$0xff]  ;;  %v822_v16 = vstv %s2466_s30  ;;  %s2544_s30 = sld [smem:[#allocation5 + $0x30]] }
 0x139   : > { %685 = vrot.lane.b32.xlu2 %v681_v19, %s2125_s6  ;;  %v824_v21 = vmul.f32 %v822_v16, %v2478_v44 }
 0x13a   : > { %v382_v22 = vpop.permute.xlu1 %381  ;;  %v396_v48 = vpop.permute.xlu0 %395 }
 0x13b   : > { %v387_v23 = vadd.f32 %v382_v22, %v373_v20  ;;  %v434_v24 = vpop.permute.xlu2 %433  ;;  %v810_v22 = vmul.f32 %v808_v1, %v2478_v44 }
 0x13d   : > { %v401_v30 = vadd.f32 %v396_v48, %v387_v23  ;;  %v513_v48 = vmul.f32 %v512_v17, %v2344_v18  ;;  %v514_v18 = vmul.f32 %v512_v17, %v2353_v25 }
 0x13f   : > { %v415_v34 = vadd.f32 %v410_v10, %v401_v30 }
 0x140   : > { %737 = vrot.lane.b32.xlu0 %v732_v31, %s2122_s1  ;;  %723 = vrot.lane.b32.xlu1 %v718_v32, %s2120_s10 }
 0x141   : > { %v423_v37 = vadd.f32 %v421_v33, %v415_v34  ;;  %709 = vrot.lane.b32.xlu2 %v704_v35, %s2121_s11  ;;  %v850_v33 = vstv %s2476_s12  ;;  %v836_v34 = vstv %s2481_s13  ;;  %s2556_s12 = sld [smem:[#allocation5 + $0x32]] }
 0x142   : > { %v398_v38 = vpop.permute.xlu1 %397  ;;  %v412_v39 = vpop.permute.xlu0 %411  ;;  %s2568_s13 = sld [smem:[#allocation5 + $0x34]] }
 0x143   : > { %v402_v40 = vadd.f32 %v398_v38, %v388_v36  ;;  %v460_v42 = vpop.permute.xlu2 %459  ;;  %v851_v36 = vmul.f32 %v850_v33, %v2462_v0 }
 0x145   : > { %v416_v46 = vadd.f32 %v412_v39, %v402_v40  ;;  %v823_v39 = vmul.f32 %v822_v16, %v2462_v0 }
 0x147   : > { %v424_v51 = vadd.f32 %v422_v62, %v416_v46  ;;  %v864_v62 = vstv %s2493_s20  ;;  %s2570_s20 = sld [smem:[#allocation5 + $0x1c]] }
 0x148   : > { %763 = vrot.lane.b32.xlu0 %v759_v47, %s2123_s27  ;;  %749 = vrot.lane.b32.xlu1 %v745_v50, %s2124_s28  ;;  %v866_v47 = vmul.f32 %v864_v62, %v2478_v44  ;;  %v852_v50 = vmul.f32 %v850_v33, %v2478_v44  ;;  %v865_v1 = vmul.f32 %v864_v62, %v2462_v0  ;;  %v992_v62 = vstv %s2553_s4  ;;  %s2629_s4 = sld [smem:[#allocation5 + $0x3d]] }
 0x149   : > { %735 = vrot.lane.b32.xlu2 %v731_v52, %s2122_s1  ;;  %v438_v7 = vadd.f32 %v434_v24, %v424_v51  ;;  %v796_v24 = vmul.f32 %v794_v2, %v2478_v44  ;;  %v838_v52 = vmul.f32 %v836_v34, %v2478_v44 }
 0x14a   : > { %v432_v53 = vpop.permute.xlu1 %431  ;;  %v446_v54 = vpop.permute.xlu0 %445 }
 0x14b   : > { %v476_v4 = vpop.permute.xlu2 %475  ;;  %v437_v59 = vadd.f32 %v432_v53, %v423_v37  ;;  %v837_v37 = vmul.f32 %v836_v34, %v2462_v0 }
 0x14d   : > { %v451_v3 = vadd.f32 %v446_v54, %v437_v59 }
 0x14f   : > { %v465_v9 = vadd.f32 %v460_v42, %v451_v3 }
 0x150   : > { %779 = vrot.lane.b32.xlu0 %v774_v56, %s2125_s6  ;;  %765 = vrot.lane.b32.xlu1 %v760_v57, %s2123_s27  ;;  %v2513_v56 = vld [vmem:[#allocation3 + $0x6] sm:$0xff]  ;;  %v900_v57 = vstv %s2502_s29  ;;  %s2578_s29 = sld [smem:[#allocation5 + $0x36]] }
 0x151   : > { %751 = vrot.lane.b32.xlu2 %v746_v58, %s2124_s28  ;;  %v886_v58 = vstv %s2505_s7  ;;  %s2583_s7 = sld [smem:[#allocation5 + $0x35]] }
 0x152   : > { %v448_v60 = vpop.permute.xlu1 %447  ;;  %v462_v61 = vpop.permute.xlu0 %461 }
 0x153   : > { %v502_v63 = vpop.permute.xlu2 %501  ;;  %v452_v10 = vadd.f32 %v448_v60, %v438_v7  ;;  %v901_v60 = vmul.f32 %v900_v57, %v2513_v56  ;;  %v2529_v7 = vld [vmem:[#allocation3 + $0xe] sm:$0xff] }
 0x154   : > { %v888_v16 = vmul.f32 %v886_v58, %v2529_v7 }
 0x155   : > { %v466_v19 = vadd.f32 %v462_v61, %v452_v10  ;;  %v887_v61 = vmul.f32 %v886_v58, %v2513_v56  ;;  %v2580_v58 = vld [vmem:[#allocation3 + $0x20] sm:$0xff] }
 0x157   : > { %v480_v27 = vadd.f32 %v476_v4, %v466_v19 }
 0x158   : > { %813 = vrot.lane.b32.xlu0 %v809_v5, %s2120_s10  ;;  %799 = vrot.lane.b32.xlu1 %v795_v6, %s2121_s11 }
 0x159   : > { %777 = vrot.lane.b32.xlu2 %v773_v8, %s2125_s6  ;;  %v914_v8 = vstv %s2517_s8  ;;  %s2595_s8 = sld [smem:[#allocation5 + $0x37]] }
 0x15a   : > { %v474_v12 = vpop.permute.xlu1 %473  ;;  %v488_v13 = vpop.permute.xlu0 %487 }
 0x15b   : > { %v479_v14 = vadd.f32 %v474_v12, %v465_v9  ;;  %v526_v15 = vpop.permute.xlu2 %525  ;;  %v604_v9 = vstv %s2519_s9  ;;  %v916_v12 = vmul.f32 %v914_v8, %v2529_v7  ;;  %s2604_s9 = sld [smem:[#allocation5 + $0x3a]] }
 0x15d   : > { %v493_v20 = vadd.f32 %v488_v13, %v479_v14  ;;  %v902_v13 = vmul.f32 %v900_v57, %v2529_v7  ;;  %v605_v14 = vmul.f32 %v604_v9, %v2374_v41  ;;  %v606_v41 = vmul.f32 %v604_v9, %v2382_v49 }
 0x15f   : > { %v507_v23 = vadd.f32 %v502_v63, %v493_v20 }
 0x160   : > { %829 = vrot.lane.b32.xlu0 %v824_v21, %s2122_s1  ;;  %815 = vrot.lane.b32.xlu1 %v810_v22, %s2120_s10 }
 0x161   : > { %v515_v28 = vadd.f32 %v513_v48, %v507_v23  ;;  %801 = vrot.lane.b32.xlu2 %v796_v24, %s2121_s11  ;;  %v942_v48 = vstv %s2527_s22  ;;  %v928_v23 = vstv %s2532_s24  ;;  %s2607_s22 = sld [smem:[#allocation5 + $0x39]] }
 0x162   : > { %v490_v29 = vpop.permute.xlu1 %489  ;;  %v504_v30 = vpop.permute.xlu0 %503  ;;  %s2619_s24 = sld [smem:[#allocation5 + $0x3b]] }
 0x163   : > { %v494_v31 = vadd.f32 %v490_v29, %v480_v27  ;;  %v552_v32 = vpop.permute.xlu2 %551  ;;  %v943_v27 = vmul.f32 %v942_v48, %v2513_v56 }
 0x165   : > { %v508_v35 = vadd.f32 %v504_v30, %v494_v31  ;;  %v915_v30 = vmul.f32 %v914_v8, %v2513_v56 }
 0x167   : > { %v516_v38 = vadd.f32 %v514_v18, %v508_v35  ;;  %v956_v18 = vstv %s2544_s30  ;;  %s2621_s30 = sld [smem:[#allocation5 + $0x23]] }
 0x168   : > { %855 = vrot.lane.b32.xlu0 %v851_v36, %s2123_s27  ;;  %841 = vrot.lane.b32.xlu1 %v837_v37, %s2124_s28  ;;  %v958_v36 = vmul.f32 %v956_v18, %v2529_v7  ;;  %v944_v37 = vmul.f32 %v942_v48, %v2529_v7 }
 0x169   : > { %v530_v40 = vadd.f32 %v526_v15, %v516_v38  ;;  %827 = vrot.lane.b32.xlu2 %v823_v39, %s2122_s1  ;;  %v930_v39 = vmul.f32 %v928_v23, %v2529_v7 }
 0x16a   : > { %v524_v42 = vpop.permute.xlu1 %523  ;;  %v538_v43 = vpop.permute.xlu0 %537 }
 0x16b   : > { %v529_v25 = vadd.f32 %v524_v42, %v515_v28  ;;  %v568_v45 = vpop.permute.xlu2 %567  ;;  %v929_v28 = vmul.f32 %v928_v23, %v2513_v56 }
 0x16d   : > { %v543_v46 = vadd.f32 %v538_v43, %v529_v25 }
 0x16f   : > { %v557_v51 = vadd.f32 %v552_v32, %v543_v46  ;;  %v978_v46 = vstv %s2556_s12  ;;  %s2634_s12 = sld [smem:[#allocation5 + $0x3c]] }
 0x170   : > { %871 = vrot.lane.b32.xlu0 %v866_v47, %s2125_s6  ;;  %857 = vrot.lane.b32.xlu1 %v852_v50, %s2123_s27 }
 0x171   : > { %843 = vrot.lane.b32.xlu2 %v838_v52, %s2124_s28 }
 0x172   : > { %v540_v53 = vpop.permute.xlu1 %539  ;;  %v554_v54 = vpop.permute.xlu0 %553 }
 0x173   : > { %v544_v4 = vadd.f32 %v540_v53, %v530_v40  ;;  %v594_v55 = vpop.permute.xlu2 %593  ;;  %v957_v53 = vmul.f32 %v956_v18, %v2513_v56  ;;  %v1084_v18 = vstv %s2604_s9  ;;  %s2680_s9 = sld [smem:[#allocation5 + $0x44]] }
 0x175   : > { %v558_v59 = vadd.f32 %v554_v54, %v544_v4 }
 0x177   : > { %v572_v63 = vadd.f32 %v568_v45, %v558_v59  ;;  %v2564_v45 = vld [vmem:[#allocation3 + $0x18] sm:$0xff]  ;;  %v1006_v59 = vstv %s2568_s13  ;;  %s2646_s13 = sld [smem:[#allocation5 + $0x3e]] }
 0x178   : > { %905 = vrot.lane.b32.xlu0 %v901_v60, %s2120_s10  ;;  %891 = vrot.lane.b32.xlu1 %v887_v61, %s2121_s11  ;;  %v993_v50 = vmul.f32 %v992_v62, %v2564_v45  ;;  %v696_v60 = vstv %s2570_s20  ;;  %s2655_s20 = sld [smem:[#allocation5 + $0x41]] }
 0x179   : > { %869 = vrot.lane.b32.xlu2 %v865_v1, %s2125_s6  ;;  %v994_v1 = vmul.f32 %v992_v62, %v2580_v58 }
 0x17a   : > { %v566_v2 = vpop.permute.xlu1 %565  ;;  %v580_v3 = vpop.permute.xlu0 %579 }
 0x17b   : > { %v571_v5 = vadd.f32 %v566_v2, %v557_v51  ;;  %v618_v6 = vpop.permute.xlu2 %617  ;;  %v979_v51 = vmul.f32 %v978_v46, %v2564_v45  ;;  %v697_v2 = vmul.f32 %v696_v60, %v2410_v11  ;;  %v698_v11 = vmul.f32 %v696_v60, %v2427_v26 }
 0x17d   : > { %v585_v10 = vadd.f32 %v580_v3, %v571_v5  ;;  %v980_v5 = vmul.f32 %v978_v46, %v2580_v58  ;;  %v2631_v46 = vld [vmem:[#allocation3 + $0x21] sm:$0xff] }
 0x17f   : > { %v599_v15 = vadd.f32 %v594_v55, %v585_v10 }
 0x180   : > { %921 = vrot.lane.b32.xlu0 %v916_v12, %s2122_s1  ;;  %907 = vrot.lane.b32.xlu1 %v902_v13, %s2120_s10  ;;  %v1034_v13 = vstv %s2578_s29  ;;  %s2658_s29 = sld [smem:[#allocation5 + $0x40]] }
 0x181   : > { %v607_v17 = vadd.f32 %v605_v14, %v599_v15  ;;  %893 = vrot.lane.b32.xlu2 %v888_v16, %s2121_s11  ;;  %v1020_v14 = vstv %s2583_s7  ;;  %v1035_v16 = vmul.f32 %v1034_v13, %v2564_v45  ;;  %s2670_s7 = sld [smem:[#allocation5 + $0x42]] }
 0x182   : > { %v582_v19 = vpop.permute.xlu1 %581  ;;  %v596_v20 = vpop.permute.xlu0 %595 }
 0x183   : > { %v586_v21 = vadd.f32 %v582_v19, %v572_v63  ;;  %v644_v22 = vpop.permute.xlu2 %643  ;;  %v1008_v63 = vmul.f32 %v1006_v59, %v2580_v58 }
 0x185   : > { %v600_v24 = vadd.f32 %v596_v20, %v586_v21  ;;  %v1007_v20 = vmul.f32 %v1006_v59, %v2564_v45 }
 0x187   : > { %v608_v29 = vadd.f32 %v606_v41, %v600_v24  ;;  %v1048_v41 = vstv %s2595_s8  ;;  %s2672_s8 = sld [smem:[#allocation5 + $0x2a]] }
 0x188   : > { %947 = vrot.lane.b32.xlu0 %v943_v27, %s2123_s27  ;;  %933 = vrot.lane.b32.xlu1 %v929_v28, %s2124_s28  ;;  %v1050_v27 = vmul.f32 %v1048_v41, %v2580_v58  ;;  %v1036_v28 = vmul.f32 %v1034_v13, %v2580_v58 }
 0x189   : > { %v622_v31 = vadd.f32 %v618_v6, %v608_v29  ;;  %919 = vrot.lane.b32.xlu2 %v915_v30, %s2122_s1  ;;  %v1022_v30 = vmul.f32 %v1020_v14, %v2580_v58 }
 0x18a   : > { %v616_v32 = vpop.permute.xlu1 %615  ;;  %v630_v33 = vpop.permute.xlu0 %629 }
 0x18b   : > { %v621_v49 = vadd.f32 %v616_v32, %v607_v17  ;;  %v660_v34 = vpop.permute.xlu2 %659  ;;  %v1021_v17 = vmul.f32 %v1020_v14, %v2564_v45 }
 0x18d   : > { %v635_v35 = vadd.f32 %v630_v33, %v621_v49 }
 0x18f   : > { %v649_v38 = vadd.f32 %v644_v22, %v635_v35  ;;  %v1070_v35 = vstv %s2607_s22  ;;  %s2685_s22 = sld [smem:[#allocation5 + $0x43]] }
 0x190   : > { %963 = vrot.lane.b32.xlu0 %v958_v36, %s2125_s6  ;;  %949 = vrot.lane.b32.xlu1 %v944_v37, %s2123_s27 }
 0x191   : > { %935 = vrot.lane.b32.xlu2 %v930_v39, %s2124_s28 }
 0x192   : > { %v632_v40 = vpop.permute.xlu1 %631  ;;  %v646_v42 = vpop.permute.xlu0 %645 }
 0x193   : > { %v636_v43 = vadd.f32 %v632_v40, %v622_v31  ;;  %v686_v25 = vpop.permute.xlu2 %685  ;;  %v1049_v40 = vmul.f32 %v1048_v41, %v2564_v45  ;;  %v1176_v41 = vstv %s2655_s20  ;;  %s2731_s20 = sld [smem:[#allocation5 + $0x4b]] }
 0x195   : > { %v650_v47 = vadd.f32 %v646_v42, %v636_v43 }
 0x197   : > { %v664_v52 = vadd.f32 %v660_v34, %v650_v47  ;;  %v2615_v34 = vld [vmem:[#allocation3 + $0x19] sm:$0xff]  ;;  %v1098_v47 = vstv %s2619_s24  ;;  %s2697_s24 = sld [smem:[#allocation5 + $0x45]] }
 0x198   : > { %997 = vrot.lane.b32.xlu0 %v993_v50, %s2120_s10  ;;  %983 = vrot.lane.b32.xlu1 %v979_v51, %s2121_s11  ;;  %v1085_v37 = vmul.f32 %v1084_v18, %v2615_v34  ;;  %v788_v50 = vstv %s2621_s30  ;;  %s2706_s30 = sld [smem:[#allocation5 + $0x48]] }
 0x199   : > { %961 = vrot.lane.b32.xlu2 %v957_v53, %s2125_s6  ;;  %v1086_v53 = vmul.f32 %v1084_v18, %v2631_v46 }
 0x19a   : > { %v658_v54 = vpop.permute.xlu1 %657  ;;  %v672_v4 = vpop.permute.xlu0 %671 }
 0x19b   : > { %v663_v55 = vadd.f32 %v658_v54, %v649_v38  ;;  %v710_v57 = vpop.permute.xlu2 %709  ;;  %v1071_v38 = vmul.f32 %v1070_v35, %v2615_v34  ;;  %v789_v54 = vmul.f32 %v788_v50, %v2462_v0  ;;  %v790_v0 = vmul.f32 %v788_v50, %v2478_v44 }
 0x19d   : > { %v677_v61 = vadd.f32 %v672_v4, %v663_v55  ;;  %v1072_v55 = vmul.f32 %v1070_v35, %v2631_v46  ;;  %v2682_v35 = vld [vmem:[#allocation3 + $0x22] sm:$0xff] }
 0x19f   : > { %v691_v3 = vadd.f32 %v686_v25, %v677_v61 }
 0x1a0   : > { %1013 = vrot.lane.b32.xlu0 %v1008_v63, %s2122_s1  ;;  %999 = vrot.lane.b32.xlu1 %v994_v1, %s2120_s10  ;;  %v1126_v1 = vstv %s2629_s4  ;;  %s2709_s4 = sld [smem:[#allocation5 + $0x47]] }
 0x1a1   : > { %v699_v6 = vadd.f32 %v697_v2, %v691_v3  ;;  %985 = vrot.lane.b32.xlu2 %v980_v5, %s2121_s11  ;;  %v1112_v2 = vstv %s2634_s12  ;;  %v1127_v5 = vmul.f32 %v1126_v1, %v2615_v34  ;;  %s2721_s12 = sld [smem:[#allocation5 + $0x31]] }
 0x1a2   : > { %v674_v8 = vpop.permute.xlu1 %673  ;;  %v688_v9 = vpop.permute.xlu0 %687 }
 0x1a3   : > { %v678_v10 = vadd.f32 %v674_v8, %v664_v52  ;;  %v736_v12 = vpop.permute.xlu2 %735  ;;  %v1100_v52 = vmul.f32 %v1098_v47, %v2631_v46 }
 0x1a5   : > { %v692_v15 = vadd.f32 %v688_v9, %v678_v10  ;;  %v1099_v9 = vmul.f32 %v1098_v47, %v2615_v34 }
 0x1a7   : > { %v700_v19 = vadd.f32 %v698_v11, %v692_v15  ;;  %v1140_v11 = vstv %s2646_s13  ;;  %s2723_s13 = sld [smem:[#allocation5 + $0x49]] }
 0x1a8   : > { %1039 = vrot.lane.b32.xlu0 %v1035_v16, %s2123_s27  ;;  %1025 = vrot.lane.b32.xlu1 %v1021_v17, %s2124_s28  ;;  %v1142_v16 = vmul.f32 %v1140_v11, %v2631_v46  ;;  %v1128_v17 = vmul.f32 %v1126_v1, %v2631_v46 }
 0x1a9   : > { %v714_v21 = vadd.f32 %v710_v57, %v700_v19  ;;  %1011 = vrot.lane.b32.xlu2 %v1007_v20, %s2122_s1  ;;  %v1114_v20 = vmul.f32 %v1112_v2, %v2631_v46 }
 0x1aa   : > { %v708_v22 = vpop.permute.xlu1 %707  ;;  %v722_v48 = vpop.permute.xlu0 %721 }
 0x1ab   : > { %v713_v26 = vadd.f32 %v708_v22, %v699_v6  ;;  %v752_v23 = vpop.permute.xlu2 %751  ;;  %v1113_v6 = vmul.f32 %v1112_v2, %v2615_v34 }
 0x1ad   : > { %v727_v24 = vadd.f32 %v722_v48, %v713_v26 }
 0x1af   : > { %v741_v29 = vadd.f32 %v736_v12, %v727_v24  ;;  %v1162_v24 = vstv %s2658_s29  ;;  %s2735_s29 = sld [smem:[#allocation5 + $0x4a]] }
 0x1b0   : > { %1055 = vrot.lane.b32.xlu0 %v1050_v27, %s2125_s6  ;;  %1041 = vrot.lane.b32.xlu1 %v1036_v28, %s2123_s27 }
 0x1b1   : > { %1027 = vrot.lane.b32.xlu2 %v1022_v30, %s2124_s28 }
 0x1b2   : > { %v724_v31 = vpop.permute.xlu1 %723  ;;  %v738_v32 = vpop.permute.xlu0 %737 }
 0x1b3   : > { %v728_v33 = vadd.f32 %v724_v31, %v714_v21  ;;  %v778_v49 = vpop.permute.xlu2 %777  ;;  %v1141_v31 = vmul.f32 %v1140_v11, %v2615_v34  ;;  %v1268_v11 = vstv %s2706_s30  ;;  %s2782_s30 = sld [smem:[#allocation5 + $0x52]] }
 0x1b5   : > { %v742_v36 = vadd.f32 %v738_v32, %v728_v33 }
 0x1b7   : > { %v756_v39 = vadd.f32 %v752_v23, %v742_v36  ;;  %v2666_v23 = vld [vmem:[#allocation3 + $0x1a] sm:$0xff]  ;;  %v1190_v36 = vstv %s2670_s7  ;;  %s2749_s7 = sld [smem:[#allocation5 + $0x4c]] }
 0x1b8   : > { %1089 = vrot.lane.b32.xlu0 %v1085_v37, %s2120_s10  ;;  %1075 = vrot.lane.b32.xlu1 %v1071_v38, %s2121_s11  ;;  %v1177_v28 = vmul.f32 %v1176_v41, %v2666_v23  ;;  %v880_v37 = vstv %s2672_s8  ;;  %s2757_s8 = sld [smem:[#allocation5 + $0x4f]] }
 0x1b9   : > { %1053 = vrot.lane.b32.xlu2 %v1049_v40, %s2125_s6  ;;  %v1178_v40 = vmul.f32 %v1176_v41, %v2682_v35 }
 0x1ba   : > { %v750_v42 = vpop.permute.xlu1 %749  ;;  %v764_v43 = vpop.permute.xlu0 %763 }
 0x1bb   : > { %v755_v25 = vadd.f32 %v750_v42, %v741_v29  ;;  %v802_v62 = vpop.permute.xlu2 %801  ;;  %v1163_v29 = vmul.f32 %v1162_v24, %v2666_v23  ;;  %v881_v42 = vmul.f32 %v880_v37, %v2513_v56  ;;  %v882_v56 = vmul.f32 %v880_v37, %v2529_v7 }
 0x1bd   : > { %v769_v51 = vadd.f32 %v764_v43, %v755_v25  ;;  %v1164_v25 = vmul.f32 %v1162_v24, %v2682_v35  ;;  %v2733_v24 = vld [vmem:[#allocation3 + $0x23] sm:$0xff] }
 0x1bf   : > { %v783_v4 = vadd.f32 %v778_v49, %v769_v51 }
 0x1c0   : > { %1105 = vrot.lane.b32.xlu0 %v1100_v52, %s2122_s1  ;;  %1091 = vrot.lane.b32.xlu1 %v1086_v53, %s2120_s10  ;;  %v1218_v53 = vstv %s2680_s9  ;;  %s2759_s9 = sld [smem:[#allocation5 + $0x4e]] }
 0x1c1   : > { %v791_v57 = vadd.f32 %v789_v54, %v783_v4  ;;  %1077 = vrot.lane.b32.xlu2 %v1072_v55, %s2121_s11  ;;  %v1204_v54 = vstv %s2685_s22  ;;  %v1219_v55 = vmul.f32 %v1218_v53, %v2666_v23  ;;  %s2772_s22 = sld [smem:[#allocation5 + $0x38]] }
 0x1c2   : > { %v766_v59 = vpop.permute.xlu1 %765  ;;  %v780_v60 = vpop.permute.xlu0 %779 }
 0x1c3   : > { %v770_v61 = vadd.f32 %v766_v59, %v756_v39  ;;  %v828_v63 = vpop.permute.xlu2 %827  ;;  %v1192_v39 = vmul.f32 %v1190_v36, %v2682_v35 }
 0x1c5   : > { %v784_v3 = vadd.f32 %v780_v60, %v770_v61  ;;  %v1191_v60 = vmul.f32 %v1190_v36, %v2666_v23 }
 0x1c7   : > { %v792_v8 = vadd.f32 %v790_v0, %v784_v3  ;;  %v1232_v0 = vstv %s2697_s24  ;;  %s2774_s24 = sld [smem:[#allocation5 + $0x50]] }
 0x1c8   : > { %1131 = vrot.lane.b32.xlu0 %v1127_v5, %s2123_s27  ;;  %1117 = vrot.lane.b32.xlu1 %v1113_v6, %s2124_s28  ;;  %v1234_v5 = vmul.f32 %v1232_v0, %v2682_v35  ;;  %v1220_v6 = vmul.f32 %v1218_v53, %v2682_v35 }
 0x1c9   : > { %v806_v10 = vadd.f32 %v802_v62, %v792_v8  ;;  %1103 = vrot.lane.b32.xlu2 %v1099_v9, %s2122_s1  ;;  %v1206_v9 = vmul.f32 %v1204_v54, %v2682_v35 }
 0x1ca   : > { %v800_v12 = vpop.permute.xlu1 %799  ;;  %v814_v13 = vpop.permute.xlu0 %813 }
 0x1cb   : > { %v805_v44 = vadd.f32 %v800_v12, %v791_v57  ;;  %v844_v14 = vpop.permute.xlu2 %843  ;;  %v1205_v57 = vmul.f32 %v1204_v54, %v2666_v23 }
 0x1cd   : > { %v819_v15 = vadd.f32 %v814_v13, %v805_v44 }
 0x1cf   : > { %v833_v19 = vadd.f32 %v828_v63, %v819_v15  ;;  %v1254_v15 = vstv %s2709_s4  ;;  %s2786_s4 = sld [smem:[#allocation5 + $0x51]] }
 0x1d0   : > { %1147 = vrot.lane.b32.xlu0 %v1142_v16, %s2125_s6  ;;  %1133 = vrot.lane.b32.xlu1 %v1128_v17, %s2123_s27 }
 0x1d1   : > { %1119 = vrot.lane.b32.xlu2 %v1114_v20, %s2124_s28 }
 0x1d2   : > { %v816_v21 = vpop.permute.xlu1 %815  ;;  %v830_v22 = vpop.permute.xlu0 %829 }
 0x1d3   : > { %v820_v48 = vadd.f32 %v816_v21, %v806_v10  ;;  %v870_v26 = vpop.permute.xlu2 %869  ;;  %v1233_v21 = vmul.f32 %v1232_v0, %v2666_v23  ;;  %v1360_v0 = vstv %s2757_s8  ;;  %s2833_s8 = sld [smem:[#allocation5 + $0x58]] }
 0x1d5   : > { %v834_v27 = vadd.f32 %v830_v22, %v820_v48 }
 0x1d7   : > { %v848_v30 = vadd.f32 %v844_v14, %v834_v27  ;;  %v2717_v14 = vld [vmem:[#allocation3 + $0x1b] sm:$0xff]  ;;  %v972_v27 = vstv %s2721_s12  ;;  %s2800_s12 = sld [smem:[#allocation5 + $0x53]] }
 0x1d8   : > { %1181 = vrot.lane.b32.xlu0 %v1177_v28, %s2120_s10  ;;  %1167 = vrot.lane.b32.xlu1 %v1163_v29, %s2121_s11  ;;  %v1269_v17 = vmul.f32 %v1268_v11, %v2717_v14  ;;  %v1282_v29 = vstv %s2723_s13  ;;  %s2808_s13 = sld [smem:[#allocation5 + $0x56]] }
 0x1d9   : > { %1145 = vrot.lane.b32.xlu2 %v1141_v31, %s2125_s6  ;;  %v1270_v31 = vmul.f32 %v1268_v11, %v2733_v24 }
 0x1da   : > { %v842_v32 = vpop.permute.xlu1 %841  ;;  %v856_v33 = vpop.permute.xlu0 %855 }
 0x1db   : > { %v847_v49 = vadd.f32 %v842_v32, %v833_v19  ;;  %v894_v18 = vpop.permute.xlu2 %893  ;;  %v1255_v19 = vmul.f32 %v1254_v15, %v2717_v14 }
 0x1dd   : > { %v861_v38 = vadd.f32 %v856_v33, %v847_v49  ;;  %v1256_v33 = vmul.f32 %v1254_v15, %v2733_v24  ;;  %v973_v49 = vmul.f32 %v972_v27, %v2564_v45  ;;  %v2784_v15 = vld [vmem:[#allocation3 + $0x24] sm:$0xff] }
 0x1df   : > { %v875_v43 = vadd.f32 %v870_v26, %v861_v38 }
 0x1e0   : > { %1197 = vrot.lane.b32.xlu0 %v1192_v39, %s2122_s1  ;;  %1183 = vrot.lane.b32.xlu1 %v1178_v40, %s2120_s10  ;;  %v1310_v40 = vstv %s2731_s20  ;;  %s2810_s20 = sld [smem:[#allocation5 + $0x55]] }
 0x1e1   : > { %v883_v62 = vadd.f32 %v881_v42, %v875_v43  ;;  %1169 = vrot.lane.b32.xlu2 %v1164_v25, %s2121_s11  ;;  %v1296_v42 = vstv %s2735_s29  ;;  %v974_v43 = vmul.f32 %v972_v27, %v2580_v58  ;;  %v1311_v45 = vmul.f32 %v1310_v40, %v2717_v14  ;;  %s2823_s29 = sld [smem:[#allocation5 + $0x3f]] }
 0x1e2   : > { %v858_v47 = vpop.permute.xlu1 %857  ;;  %v872_v50 = vpop.permute.xlu0 %871 }
 0x1e3   : > { %v862_v51 = vadd.f32 %v858_v47, %v848_v30  ;;  %v920_v52 = vpop.permute.xlu2 %919  ;;  %v1284_v30 = vmul.f32 %v1282_v29, %v2733_v24 }
 0x1e5   : > { %v876_v4 = vadd.f32 %v872_v50, %v862_v51  ;;  %v1283_v50 = vmul.f32 %v1282_v29, %v2717_v14 }
 0x1e7   : > { %v884_v59 = vadd.f32 %v882_v56, %v876_v4  ;;  %v1324_v4 = vstv %s2749_s7  ;;  %s2825_s7 = sld [smem:[#allocation5 + $0x57]] }
 0x1e8   : > { %1223 = vrot.lane.b32.xlu0 %v1219_v55, %s2123_s27  ;;  %1209 = vrot.lane.b32.xlu1 %v1205_v57, %s2124_s28  ;;  %v1326_v55 = vmul.f32 %v1324_v4, %v2733_v24  ;;  %v1312_v57 = vmul.f32 %v1310_v40, %v2733_v24 }
 0x1e9   : > { %v898_v61 = vadd.f32 %v894_v18, %v884_v59  ;;  %1195 = vrot.lane.b32.xlu2 %v1191_v60, %s2122_s1  ;;  %v1298_v59 = vmul.f32 %v1296_v42, %v2733_v24 }
 0x1ea   : > { %v892_v63 = vpop.permute.xlu1 %891  ;;  %v906_v1 = vpop.permute.xlu0 %905 }
 0x1eb   : > { %v897_v7 = vadd.f32 %v892_v63, %v883_v62  ;;  %v936_v2 = vpop.permute.xlu2 %935  ;;  %v1297_v62 = vmul.f32 %v1296_v42, %v2717_v14 }
 0x1ed   : > { %v911_v3 = vadd.f32 %v906_v1, %v897_v7 }
 0x1ef   : > { %v925_v8 = vadd.f32 %v920_v52, %v911_v3  ;;  %v1346_v3 = vstv %s2759_s9  ;;  %s2837_s9 = sld [smem:[#allocation5 + $0x59]] }
 0x1f0   : > { %1239 = vrot.lane.b32.xlu0 %v1234_v5, %s2125_s6  ;;  %1225 = vrot.lane.b32.xlu1 %v1220_v6, %s2123_s27 }
 0x1f1   : > { %1211 = vrot.lane.b32.xlu2 %v1206_v9, %s2124_s28  ;;  %v1325_v9 = vmul.f32 %v1324_v4, %v2717_v14  ;;  %v1438_v4 = vstv %s2810_s20  ;;  %s2888_s20 = sld [smem:[#allocation5 + $0x60]] }
 0x1f2   : > { %v908_v10 = vpop.permute.xlu1 %907  ;;  %v922_v12 = vpop.permute.xlu0 %921 }
 0x1f3   : > { %v912_v13 = vadd.f32 %v908_v10, %v898_v61  ;;  %v962_v44 = vpop.permute.xlu2 %961 }
 0x1f5   : > { %v926_v16 = vadd.f32 %v922_v12, %v912_v13 }
 0x1f7   : > { %v940_v20 = vadd.f32 %v936_v2, %v926_v16  ;;  %v2768_v2 = vld [vmem:[#allocation3 + $0x1c] sm:$0xff]  ;;  %v1064_v16 = vstv %s2772_s22  ;;  %s2851_s22 = sld [smem:[#allocation5 + $0x5a]] }
 0x1f8   : > { %1273 = vrot.lane.b32.xlu0 %v1269_v17, %s2120_s10  ;;  %1259 = vrot.lane.b32.xlu1 %v1255_v19, %s2121_s11  ;;  %v1361_v6 = vmul.f32 %v1360_v0, %v2768_v2  ;;  %v1374_v19 = vstv %s2774_s24  ;;  %s2859_s24 = sld [smem:[#allocation5 + $0x5c]] }
 0x1f9   : > { %1237 = vrot.lane.b32.xlu2 %v1233_v21, %s2125_s6  ;;  %v1362_v21 = vmul.f32 %v1360_v0, %v2784_v15 }
 0x1fa   : > { %v934_v22 = vpop.permute.xlu1 %933  ;;  %v948_v48 = vpop.permute.xlu0 %947 }
 0x1fb   : > { %v939_v26 = vadd.f32 %v934_v22, %v925_v8  ;;  %v986_v41 = vpop.permute.xlu2 %985  ;;  %v1347_v8 = vmul.f32 %v1346_v3, %v2768_v2 }
 0x1fd   : > { %v953_v28 = vadd.f32 %v948_v48, %v939_v26  ;;  %v1348_v48 = vmul.f32 %v1346_v3, %v2784_v15  ;;  %v1065_v26 = vmul.f32 %v1064_v16, %v2615_v34  ;;  %v2835_v3 = vld [vmem:[#allocation3 + $0x25] sm:$0xff] }
 0x1ff   : > { %v967_v32 = vadd.f32 %v962_v44, %v953_v28 }
 0x200   : > { %1289 = vrot.lane.b32.xlu0 %v1284_v30, %s2122_s1  ;;  %1275 = vrot.lane.b32.xlu1 %v1270_v31, %s2120_s10  ;;  %v1402_v31 = vstv %s2782_s30  ;;  %s2861_s30 = sld [smem:[#allocation5 + $0x5d]] }
 0x201   : > { %1261 = vrot.lane.b32.xlu2 %v1256_v33, %s2121_s11  ;;  %v975_v18 = vadd.f32 %v973_v49, %v967_v32  ;;  %v1388_v32 = vstv %s2786_s4  ;;  %v1066_v33 = vmul.f32 %v1064_v16, %v2631_v46  ;;  %v1403_v34 = vmul.f32 %v1402_v31, %v2768_v2  ;;  %s2874_s4 = sld [smem:[#allocation5 + $0x46]] }
 0x202   : > { %v950_v36 = vpop.permute.xlu1 %949  ;;  %v964_v37 = vpop.permute.xlu0 %963 }
 0x203   : > { %v954_v38 = vadd.f32 %v950_v36, %v940_v20  ;;  %v1012_v39 = vpop.permute.xlu2 %1011  ;;  %v1376_v20 = vmul.f32 %v1374_v19, %v2784_v15 }
 0x205   : > { %v968_v25 = vadd.f32 %v964_v37, %v954_v38  ;;  %v1375_v37 = vmul.f32 %v1374_v19, %v2768_v2 }
 0x207   : > { %v976_v47 = vadd.f32 %v974_v43, %v968_v25  ;;  %v1416_v25 = vstv %s2800_s12  ;;  %s2876_s12 = sld [smem:[#allocation5 + $0x5e]] }
 0x208   : > { %1315 = vrot.lane.b32.xlu0 %v1311_v45, %s2123_s27  ;;  %1301 = vrot.lane.b32.xlu1 %v1297_v62, %s2124_s28  ;;  %v1418_v45 = vmul.f32 %v1416_v25, %v2784_v15  ;;  %v1404_v62 = vmul.f32 %v1402_v31, %v2784_v15 }
 0x209   : > { %1287 = vrot.lane.b32.xlu2 %v1283_v50, %s2122_s1  ;;  %v990_v51 = vadd.f32 %v986_v41, %v976_v47  ;;  %v1390_v47 = vmul.f32 %v1388_v32, %v2784_v15 }
 0x20a   : > { %v984_v52 = vpop.permute.xlu1 %983  ;;  %v998_v58 = vpop.permute.xlu0 %997 }
 0x20b   : > { %v989_v53 = vadd.f32 %v984_v52, %v975_v18  ;;  %v1028_v54 = vpop.permute.xlu2 %1027  ;;  %v1389_v18 = vmul.f32 %v1388_v32, %v2768_v2 }
 0x20d   : > { %v1003_v56 = vadd.f32 %v998_v58, %v989_v53 }
 0x20f   : > { %v1017_v60 = vadd.f32 %v1012_v39, %v1003_v56  ;;  %v1452_v56 = vstv %s2808_s13  ;;  %s2884_s13 = sld [smem:[#allocation5 + $0x5f]] }
 0x210   : > { %1331 = vrot.lane.b32.xlu0 %v1326_v55, %s2125_s6  ;;  %1317 = vrot.lane.b32.xlu1 %v1312_v57, %s2123_s27 }
 0x211   : > { %1303 = vrot.lane.b32.xlu2 %v1298_v59, %s2124_s28 }
 0x212   : > { %v1000_v61 = vpop.permute.xlu1 %999  ;;  %v1014_v63 = vpop.permute.xlu0 %1013 }
 0x213   : > { %v1004_v1 = vadd.f32 %v1000_v61, %v990_v51  ;;  %v1054_v7 = vpop.permute.xlu2 %1053 }
 0x215   : > { %v1018_v5 = vadd.f32 %v1014_v63, %v1004_v1 }
 0x217   : > { %v1032_v10 = vadd.f32 %v1028_v54, %v1018_v5  ;;  %v2819_v54 = vld [vmem:[#allocation3 + $0x1d] sm:$0xff]  ;;  %v1156_v5 = vstv %s2823_s29  ;;  %s1879_s29 = sld [smem:[#allocation5 + $0x61]] }
 0x218   : > { %1365 = vrot.lane.b32.xlu0 %v1361_v6, %s2120_s10  ;;  %1351 = vrot.lane.b32.xlu1 %v1347_v8, %s2121_s11  ;;  %v1453_v57 = vmul.f32 %v1452_v56, %v2819_v54  ;;  %v1439_v59 = vmul.f32 %v1438_v4, %v2819_v54  ;;  %v1466_v8 = vstv %s2825_s7 }
 0x219   : > { %1329 = vrot.lane.b32.xlu2 %v1325_v9, %s2125_s6  ;;  %v1454_v9 = vmul.f32 %v1452_v56, %v2835_v3 }
 0x21a   : > { %v1026_v12 = vpop.permute.xlu1 %1025  ;;  %v1040_v13 = vpop.permute.xlu0 %1039 }
 0x21b   : > { %v1031_v44 = vadd.f32 %v1026_v12, %v1017_v60  ;;  %v1078_v11 = vpop.permute.xlu2 %1077  ;;  %v1417_v60 = vmul.f32 %v1416_v25, %v2768_v2  ;;  %v1544_v25 = vstv %s2861_s30  ;;  %s1660_s30 = scalar_lea.sflag [#allocation7], %s2256_s21 }
 0x21d   : > { %v1045_v17 = vadd.f32 %v1040_v13, %v1031_v44  ;;  %v1440_v13 = vmul.f32 %v1438_v4, %v2835_v3  ;;  %v1157_v44 = vmul.f32 %v1156_v5, %v2666_v23  ;;  %v2886_v4 = vld [vmem:[#allocation3 + $0x26] sm:$0xff] }
 0x21f   : > { %v1059_v22 = vadd.f32 %v1054_v7, %v1045_v17 }
 0x220   : > { %1381 = vrot.lane.b32.xlu0 %v1376_v20, %s2122_s1  ;;  %1367 = vrot.lane.b32.xlu1 %v1362_v21, %s2120_s10  ;;  %v1480_v21 = vstv %s2833_s8 }
 0x221   : > { %1353 = vrot.lane.b32.xlu2 %v1348_v48, %s2121_s11  ;;  %v1067_v41 = vadd.f32 %v1065_v26, %v1059_v22  ;;  %v1494_v22 = vstv %s2837_s9  ;;  %v1158_v48 = vmul.f32 %v1156_v5, %v2682_v35  ;;  %v1481_v23 = vmul.f32 %v1480_v21, %v2819_v54 }
 0x222   : > { %v1042_v27 = vpop.permute.xlu1 %1041  ;;  %v1056_v28 = vpop.permute.xlu0 %1055 }
 0x223   : > { %v1046_v29 = vadd.f32 %v1042_v27, %v1032_v10  ;;  %v1104_v30 = vpop.permute.xlu2 %1103  ;;  %v1468_v10 = vmul.f32 %v1466_v8, %v2835_v3 }
 0x225   : > { %v1060_v49 = vadd.f32 %v1056_v28, %v1046_v29  ;;  %v1467_v28 = vmul.f32 %v1466_v8, %v2819_v54 }
 0x227   : > { %v1068_v36 = vadd.f32 %v1066_v33, %v1060_v49  ;;  %v1508_v49 = vstv %s2851_s22 }
 0x228   : > { %1407 = vrot.lane.b32.xlu0 %v1403_v34, %s2123_s27  ;;  %1393 = vrot.lane.b32.xlu1 %v1389_v18, %s2124_s28  ;;  %v1496_v34 = vmul.f32 %v1494_v22, %v2835_v3  ;;  %v1510_v18 = vmul.f32 %v1508_v49, %v2835_v3 }
 0x229   : > { %1379 = vrot.lane.b32.xlu2 %v1375_v37, %s2122_s1  ;;  %v1082_v38 = vadd.f32 %v1078_v11, %v1068_v36  ;;  %v1482_v36 = vmul.f32 %v1480_v21, %v2835_v3 }
 0x22a   : > { %v1076_v39 = vpop.permute.xlu1 %1075  ;;  %v1090_v46 = vpop.permute.xlu0 %1089 }
 0x22b   : > { %v1081_v40 = vadd.f32 %v1076_v39, %v1067_v41  ;;  %v1120_v42 = vpop.permute.xlu2 %1119  ;;  %v1495_v41 = vmul.f32 %v1494_v22, %v2819_v54 }
 0x22d   : > { %v1095_v43 = vadd.f32 %v1090_v46, %v1081_v40 }
 0x22f   : > { %v1109_v50 = vadd.f32 %v1104_v30, %v1095_v43  ;;  %v1530_v43 = vstv %s2859_s24 }
 0x230   : > { %1423 = vrot.lane.b32.xlu0 %v1418_v45, %s2125_s6  ;;  %1409 = vrot.lane.b32.xlu1 %v1404_v62, %s2123_s27 }
 0x231   : > { %1395 = vrot.lane.b32.xlu2 %v1390_v47, %s2124_s28 }
 0x232   : > { %v1092_v51 = vpop.permute.xlu1 %1091  ;;  %v1106_v52 = vpop.permute.xlu0 %1105 }
 0x233   : > { %v1096_v58 = vadd.f32 %v1092_v51, %v1082_v38  ;;  %v1146_v53 = vpop.permute.xlu2 %1145 }
 0x235   : > { %v1110_v55 = vadd.f32 %v1106_v52, %v1096_v58 }
 0x237   : > { %v1124_v61 = vadd.f32 %v1120_v42, %v1110_v55  ;;  %v2870_v42 = vld [vmem:[#allocation3 + $0x1e] sm:$0xff]  ;;  %v1248_v55 = vstv %s2874_s4 }
 0x238   : > { %1457 = vrot.lane.b32.xlu0 %v1453_v57, %s2120_s10  ;;  %1443 = vrot.lane.b32.xlu1 %v1439_v59, %s2121_s11  ;;  %v1531_v62 = vmul.f32 %v1530_v43, %v2870_v42  ;;  %v1545_v47 = vmul.f32 %v1544_v25, %v2870_v42  ;;  %v1558_v59 = vstv %s2876_s12 }
 0x239   : > { %1421 = vrot.lane.b32.xlu2 %v1417_v60, %s2125_s6  ;;  %v1546_v60 = vmul.f32 %v1544_v25, %v2886_v4 }
 0x23a   : > { %v1118_v63 = vpop.permute.xlu1 %1117  ;;  %v1132_v1 = vpop.permute.xlu0 %1131 }
 0x23b   : > { %v1123_v7 = vadd.f32 %v1118_v63, %v1109_v50  ;;  %v1170_v0 = vpop.permute.xlu2 %1169  ;;  %v1509_v50 = vmul.f32 %v1508_v49, %v2819_v54 }
 0x23d   : > { %v1137_v6 = vadd.f32 %v1132_v1, %v1123_v7  ;;  %v1532_v1 = vmul.f32 %v1530_v43, %v2886_v4  ;;  %v1249_v7 = vmul.f32 %v1248_v55, %v2717_v14 }
 0x23f   : > { %v1151_v12 = vadd.f32 %v1146_v53, %v1137_v6 }
 0x240   : > { %1459 = vrot.lane.b32.xlu1 %v1454_v9, %s2120_s10  ;;  %1473 = vrot.lane.b32.xlu0 %v1468_v10, %s2122_s1  ;;  %v1572_v10 = vstv %s2884_s13 }
 0x241   : > { %1445 = vrot.lane.b32.xlu2 %v1440_v13, %s2121_s11  ;;  %v1159_v11 = vadd.f32 %v1157_v44, %v1151_v12  ;;  %v1586_v12 = vstv %s2888_s20  ;;  %v1250_v13 = vmul.f32 %v1248_v55, %v2733_v24 }
 0x242   : > { %v1134_v16 = vpop.permute.xlu1 %1133  ;;  %v1148_v17 = vpop.permute.xlu0 %1147  ;;  %v1587_v14 = vmul.f32 %v1586_v12, %v2870_v42 }
 0x243   : > { %v1138_v19 = vadd.f32 %v1134_v16, %v1124_v61  ;;  %v1196_v20 = vpop.permute.xlu2 %1195  ;;  %v1560_v61 = vmul.f32 %v1558_v59, %v2886_v4 }
 0x245   : > { %v1152_v26 = vadd.f32 %v1148_v17, %v1138_v19  ;;  %v1559_v17 = vmul.f32 %v1558_v59, %v2870_v42 }
 0x247   : > { %v1160_v27 = vadd.f32 %v1158_v48, %v1152_v26  ;;  %v1600_v26 = vstv %s1879_s29  ;;  %s2047_s29 = scalar_lea.hbm %s2966_s3, 32 }
 0x248   : > { %1485 = vrot.lane.b32.xlu1 %v1481_v23, %s2124_s28  ;;  %1499 = vrot.lane.b32.xlu0 %v1495_v41, %s2123_s27  ;;  %v1588_v23 = vmul.f32 %v1586_v12, %v2886_v4  ;;  %v1602_v41 = vmul.f32 %v1600_v26, %v2886_v4 }
 0x249   : > { %1471 = vrot.lane.b32.xlu2 %v1467_v28, %s2122_s1  ;;  %v1174_v29 = vadd.f32 %v1170_v0, %v1160_v27  ;;  %v1574_v27 = vmul.f32 %v1572_v10, %v2886_v4 }
 0x24a   : > { %v1168_v30 = vpop.permute.xlu1 %1167  ;;  %v1182_v35 = vpop.permute.xlu0 %1181 }
 0x24b   : > { %v1173_v31 = vadd.f32 %v1168_v30, %v1159_v11  ;;  %v1212_v32 = vpop.permute.xlu2 %1211  ;;  %v1573_v11 = vmul.f32 %v1572_v10, %v2870_v42 }
 0x24d   : > { %v1187_v33 = vadd.f32 %v1182_v35, %v1173_v31 }
 0x24f   : > { %v1201_v37 = vadd.f32 %v1196_v20, %v1187_v33  ;;  %v1601_v33 = vmul.f32 %v1600_v26, %v2870_v42 }
 0x250   : > { %1501 = vrot.lane.b32.xlu1 %v1496_v34, %s2123_s27  ;;  %1515 = vrot.lane.b32.xlu0 %v1510_v18, %s2125_s6 }
 0x251   : > { %1487 = vrot.lane.b32.xlu2 %v1482_v36, %s2124_s28 }
 0x252   : > { %v1184_v38 = vpop.permute.xlu1 %1183  ;;  %v1198_v39 = vpop.permute.xlu0 %1197 }
 0x253   : > { %v1188_v46 = vadd.f32 %v1184_v38, %v1174_v29  ;;  %v1238_v40 = vpop.permute.xlu2 %1237 }
 0x255   : > { %v1202_v45 = vadd.f32 %v1198_v39, %v1188_v46 }
 0x257   : > { %v1216_v51 = vadd.f32 %v1212_v32, %v1202_v45 }
 0x258   : > { %1535 = vrot.lane.b32.xlu1 %v1531_v62, %s2121_s11  ;;  %1549 = vrot.lane.b32.xlu0 %v1545_v47, %s2120_s10 }
 0x259   : > { %1513 = vrot.lane.b32.xlu2 %v1509_v50, %s2125_s6 }
 0x25a   : > { %v1210_v52 = vpop.permute.xlu1 %1209  ;;  %v1224_v58 = vpop.permute.xlu0 %1223 }
 0x25b   : > { %v1215_v53 = vadd.f32 %v1210_v52, %v1201_v37  ;;  %v1262_v56 = vpop.permute.xlu2 %1261 }
 0x25d   : > { %v1229_v57 = vadd.f32 %v1224_v58, %v1215_v53 }
 0x25f   : > { %v1243_v63 = vadd.f32 %v1238_v40, %v1229_v57 }
 0x260   : > { %1551 = vrot.lane.b32.xlu1 %v1546_v60, %s2120_s10  ;;  %1565 = vrot.lane.b32.xlu0 %v1560_v61, %s2122_s1  ;;  %s1859_s10 = sld [smem:[#allocation5 + $0x4d]] }
 0x261   : > { %1537 = vrot.lane.b32.xlu2 %v1532_v1, %s2121_s11  ;;  %v1251_v0 = vadd.f32 %v1249_v7, %v1243_v63  ;;  %s1866_s11 = sld [smem:[#allocation5 + $0x54]] }
 0x262   : > { %v1226_v5 = vpop.permute.xlu1 %1225  ;;  %v1240_v6 = vpop.permute.xlu0 %1239 }
 0x263   : > { %v1230_v8 = vadd.f32 %v1226_v5, %v1216_v51  ;;  %v1288_v9 = vpop.permute.xlu2 %1287 }
 0x265   : > { %v1244_v44 = vadd.f32 %v1240_v6, %v1230_v8 }
 0x266   : > { %v1340_v38 = vstv %s1859_s10 }
 0x267   : > { %v1252_v16 = vadd.f32 %v1250_v13, %v1244_v44  ;;  %v1341_v40 = vmul.f32 %v1340_v38, %v2768_v2  ;;  %v1342_v50 = vmul.f32 %v1340_v38, %v2784_v15  ;;  %v1432_v8 = vstv %s1866_s11 }
 0x268   : > { %1577 = vrot.lane.b32.xlu1 %v1573_v11, %s2124_s28  ;;  %1591 = vrot.lane.b32.xlu0 %v1587_v14, %s2123_s27  ;;  %v1433_v12 = vmul.f32 %v1432_v8, %v2819_v54 }
 0x269   : > { %1563 = vrot.lane.b32.xlu2 %v1559_v17, %s2122_s1  ;;  %v1266_v19 = vadd.f32 %v1262_v56, %v1252_v16  ;;  %s1873_s1 = sld [smem:[#allocation5 + $0x5b]] }
 0x26a   : > { %v1260_v20 = vpop.permute.xlu1 %1259  ;;  %v1274_v21 = vpop.permute.xlu0 %1273 }
 0x26b   : > { %v1265_v22 = vadd.f32 %v1260_v20, %v1251_v0  ;;  %v1304_v24 = vpop.permute.xlu2 %1303 }
 0x26d   : > { %v1279_v48 = vadd.f32 %v1274_v21, %v1265_v22 }
 0x26f   : > { %v1293_v28 = vadd.f32 %v1288_v9, %v1279_v48 }
 0x270   : > { %1593 = vrot.lane.b32.xlu1 %v1588_v23, %s2123_s27  ;;  %1607 = vrot.lane.b32.xlu0 %v1602_v41, %s2125_s6  ;;  %s1613_s27 = sld [smem:[#allocation4]] }
 0x271   : > { %1579 = vrot.lane.b32.xlu2 %v1574_v27, %s2124_s28  ;;  %s1782_s28 = sshll.u32 %s2256_s21, 4 }
 0x272   : > { %v1276_v29 = vpop.permute.xlu1 %1275  ;;  %v1290_v30 = vpop.permute.xlu0 %1289  ;;  %s222_s22 = scalar_lea.vmem [#allocation10], %s1782_s28 }
 0x273   : > { %v1280_v35 = vadd.f32 %v1276_v29, %v1266_v19  ;;  %v1330_v31 = vpop.permute.xlu2 %1329  ;;  %v1434_v19 = vmul.f32 %v1432_v8, %v2835_v3 }
 0x275   : > { %v1294_v32 = vadd.f32 %v1290_v30, %v1280_v35 }
 0x277   : > { %v1308_v49 = vadd.f32 %v1304_v24, %v1294_v32 }
 0x279   : > { %1605 = vrot.lane.b32.xlu2 %v1601_v33, %s2125_s6  ;;  %v1524_v33 = vstv %s1873_s1  ;;  %s1888_s6 = sshll.u32 %s2105_s17, 4  ;;  %s1672_s17 = sshll.u32 %s222_s22, 4  ;;  %s1673_s17 = int_to_ptr.vmem [resolvable:$true] %s1672_s17 }
 0x27a   : > { %v1302_v34 = vpop.permute.xlu1 %1301  ;;  %v1316_v18 = vpop.permute.xlu0 %1315  ;;  %s1671_s9 = scalar_lea.hbm %s2966_s3, %s1888_s6 }
 0x27b   : > { %v1307_v36 = vadd.f32 %v1302_v34, %v1293_v28  ;;  %v1354_v37 = vpop.permute.xlu2 %1353  ;;  %s1674_s24 = sshll.u32 %s1671_s9, 4  ;;  %s1675_s24 = int_to_ptr.hbm [resolvable:$true] %s1674_s24 }
 0x27c   : > { %s2041_s4 = sshra.s32 %s1675_s24, 4  ;;  %s2042_s4 = int_to_ptr.hbm [resolvable:$true] %s2041_s4 }
 0x27d   : > { %v1321_v39 = vadd.f32 %v1316_v18, %v1307_v36  ;;  %v1525_v36 = vmul.f32 %v1524_v33, %v2870_v42  ;;  %s2043_s12 = scalar_lea.hbm %s2042_s4, 16  ;;  %p2048_p11 = scmp.lt.s32.totalorder %s2042_s4, %s2966_s3 }
 0x27e   : > { %p2044_p3 = scmp.ne.s32.totalorder %s2042_s4, %s2043_s12  ;;  %p2049_p12 = scmp.lt.s32.totalorder %s2047_s29, %s2043_s12 }
 0x27f   : > { %v1335_v46 = vadd.f32 %v1330_v31, %v1321_v39 }
 0x280   : > { %p2045_p5 = pnand %p2044_p3, %p2203_p8  ;;  %p2050_p0 = por %p2049_p12, %p2048_p11 }
 0x281   : > { %v1343_v43 = vadd.f32 %v1341_v40, %v1335_v46 }
 0x282   : > { %v1318_v25 = vpop.permute.xlu1 %1317  ;;  %v1332_v45 = vpop.permute.xlu0 %1331  ;;  %p2046_p7 = pneg %p2045_p5 }
 0x283   : > { %v1322_v62 = vadd.f32 %v1318_v25, %v1308_v49  ;;  %v1380_v47 = vpop.permute.xlu2 %1379 }
 0x284   : > { %p2051_p1 = pnand %p2050_p0, %p2046_p7 }
 0x285   : > { %v1336_v51 = vadd.f32 %v1332_v45, %v1322_v62 }
 0x287   : > { %v1344_v52 = vadd.f32 %v1342_v50, %v1336_v51 }
 0x289   : > { %v1358_v63 = vadd.f32 %v1354_v37, %v1344_v52 }
 0x28a   : > { %v1352_v58 = vpop.permute.xlu1 %1351  ;;  %v1366_v53 = vpop.permute.xlu0 %1365 }
 0x28b   : > { %v1396_v56 = vpop.permute.xlu2 %1395  ;;  %v1357_v55 = vadd.f32 %v1352_v58, %v1343_v43  ;;  %v1526_v43 = vmul.f32 %v1524_v33, %v2886_v4 }
 0x28d   : > { %v1371_v61 = vadd.f32 %v1366_v53, %v1357_v55 }
 0x28f   : > { %v1385_v1 = vadd.f32 %v1380_v47, %v1371_v61 }
 0x292   : > { %v1368_v57 = vpop.permute.xlu1 %1367  ;;  %v1382_v59 = vpop.permute.xlu0 %1381 }
 0x293   : > { %v1422_v60 = vpop.permute.xlu2 %1421  ;;  %v1372_v2 = vadd.f32 %v1368_v57, %v1358_v63 }
 0x295   : > { %v1386_v15 = vadd.f32 %v1382_v59, %v1372_v2 }
 0x297   : > { %v1400_v13 = vadd.f32 %v1396_v56, %v1386_v15 }
 0x29a   : > { %v1394_v7 = vpop.permute.xlu1 %1393  ;;  %v1408_v0 = vpop.permute.xlu0 %1407 }
 0x29b   : > { %v1399_v5 = vadd.f32 %v1394_v7, %v1385_v1  ;;  %v1446_v6 = vpop.permute.xlu2 %1445  ;;  %v1614_v1 = vstv %s1613_s27 }
 0x29d   : > { %v1413_v9 = vadd.f32 %v1408_v0, %v1399_v5 }
 0x29f   : > { %v1427_v10 = vadd.f32 %v1422_v60, %v1413_v9 }
 0x2a1   : > { %v1435_v44 = vadd.f32 %v1433_v12, %v1427_v10 }
 0x2a2   : > { %v1410_v11 = vpop.permute.xlu1 %1409  ;;  %v1424_v14 = vpop.permute.xlu0 %1423 }
 0x2a3   : > { %v1414_v16 = vadd.f32 %v1410_v11, %v1400_v13  ;;  %v1472_v17 = vpop.permute.xlu2 %1471 }
 0x2a5   : > { %v1428_v20 = vadd.f32 %v1424_v14, %v1414_v16 }
 0x2a7   : > { %v1436_v21 = vadd.f32 %v1434_v19, %v1428_v20 }
 0x2a9   : > { %v1450_v54 = vadd.f32 %v1446_v6, %v1436_v21 }
 0x2aa   : > { %v1444_v22 = vpop.permute.xlu1 %1443  ;;  %v1458_v24 = vpop.permute.xlu0 %1457 }
 0x2ab   : > { %v1488_v48 = vpop.permute.xlu2 %1487  ;;  %v1449_v26 = vadd.f32 %v1444_v22, %v1435_v44 }
 0x2ad   : > { %v1463_v27 = vadd.f32 %v1458_v24, %v1449_v26 }
 0x2af   : > { %v1477_v30 = vadd.f32 %v1472_v17, %v1463_v27 }
 0x2b2   : > { %v1460_v23 = vpop.permute.xlu1 %1459  ;;  %v1474_v41 = vpop.permute.xlu0 %1473 }
 0x2b3   : > { %v1514_v28 = vpop.permute.xlu2 %1513  ;;  %v1464_v29 = vadd.f32 %v1460_v23, %v1450_v54 }
 0x2b5   : > { %v1478_v49 = vadd.f32 %v1474_v41, %v1464_v29 }
 0x2b7   : > { %v1492_v37 = vadd.f32 %v1488_v48, %v1478_v49 }
 0x2ba   : > { %v1486_v35 = vpop.permute.xlu1 %1485  ;;  %v1500_v31 = vpop.permute.xlu0 %1499 }
 0x2bb   : > { %v1491_v32 = vadd.f32 %v1486_v35, %v1477_v30  ;;  %v1538_v34 = vpop.permute.xlu2 %1537 }
 0x2bd   : > { %v1505_v3 = vadd.f32 %v1500_v31, %v1491_v32 }
 0x2bf   : > { %v1519_v18 = vadd.f32 %v1514_v28, %v1505_v3 }
 0x2c1   : > { %v1527_v38 = vadd.f32 %v1525_v36, %v1519_v18 }
 0x2c2   : > { %v1502_v39 = vpop.permute.xlu1 %1501  ;;  %v1516_v46 = vpop.permute.xlu0 %1515 }
 0x2c3   : > { %v1506_v40 = vadd.f32 %v1502_v39, %v1492_v37  ;;  %v1564_v62 = vpop.permute.xlu2 %1563 }
 0x2c5   : > { %v1520_v25 = vadd.f32 %v1516_v46, %v1506_v40 }
 0x2c7   : > { %v1528_v45 = vadd.f32 %v1526_v43, %v1520_v25 }
 0x2c9   : > { %v1542_v55 = vadd.f32 %v1538_v34, %v1528_v45 }
 0x2ca   : > { %v1536_v47 = vpop.permute.xlu1 %1535  ;;  %v1550_v50 = vpop.permute.xlu0 %1549 }
 0x2cb   : > { %v1541_v51 = vadd.f32 %v1536_v47, %v1527_v38  ;;  %v1580_v53 = vpop.permute.xlu2 %1579 }
 0x2cd   : > { %v1555_v56 = vadd.f32 %v1550_v50, %v1541_v51 }
 0x2cf   : > { %v1569_v57 = vadd.f32 %v1564_v62, %v1555_v56 }
 0x2d2   : > { %v1552_v52 = vpop.permute.xlu1 %1551  ;;  %v1566_v58 = vpop.permute.xlu0 %1565 }
 0x2d3   : > { %v1556_v42 = vadd.f32 %v1552_v52, %v1542_v55  ;;  %v1606_v4 = vpop.permute.xlu2 %1605 }
 0x2d5   : > { %v1570_v63 = vadd.f32 %v1566_v58, %v1556_v42 }
 0x2d7   : > { %v1584_v0 = vadd.f32 %v1580_v53, %v1570_v63 }
 0x2da   : > { %v1578_v59 = vpop.permute.xlu1 %1577  ;;  %v1592_v60 = vpop.permute.xlu0 %1591 }
 0x2db   : > { %v1583_v61 = vadd.f32 %v1578_v59, %v1569_v57 }
 0x2dd   : > { %v1597_v2 = vadd.f32 %v1592_v60, %v1583_v61 }
 0x2df   : > { %v1611_v7 = vadd.f32 %v1606_v4, %v1597_v2 }
 0x2e1   : > { %v1615_v5 = vadd.f32 %v1614_v1, %v1611_v7 }
 0x2e2   : > { %v1594_v6 = vpop.permute.xlu1 %1593  ;;  %v1608_v9 = vpop.permute.xlu0 %1607 }
 0x2e3   : > { %v1598_v8 = vadd.f32 %v1594_v6, %v1584_v0  ;;  %v1880_v15 = vmul.f32 -1.442695, %v1615_v5 }
 0x2e5   : > { %1974 = vpow2.f32 %v1880_v15  ;;  %v1612_v10 = vadd.f32 %v1608_v9, %v1598_v8 }
 0x2e7   : > { %v1616_v12 = vadd.f32 %v1614_v1, %v1612_v10 }
 0x2e9   : > { %v1881_v13 = vmul.f32 -1.442695, %v1616_v12 }
 0x2eb   : > { %v1975_v44 = vpop.eup %1974  ;;  %1976 = vpow2.f32 %v1881_v13 }
 0x2ec   : > { %v1623_v11 = vadd.f32 1.0, %v1975_v44 }
 0x2ee   : > { %1978 = vrcp.f32 %v1623_v11  ;;  %v1636_v21 = vand.u32 2147483648, %v1623_v11  ;;  %v1634_v24 = vand.u32 2147483647, %v1623_v11  ;;  %vm1630_vm5 = vweird.f32 %v1623_v11 }
 0x2f0   : > { %v1637_v41 = vor.u32 1.1754944e-38, %v1636_v21  ;;  %vm1635_vm7 = vcmp.eq.f32.partialorder %v1634_v24, 8.507059e+37 }
 0x2f1   : > { %v1977_v14 = vpop.eup %1976 }
 0x2f2   : > { %v1624_v16 = vadd.f32 1.0, %v1977_v14 }
 0x2f4   : > { %v1979_v17 = vpop.eup %1978  ;;  %1980 = vrcp.f32 %v1624_v16  ;;  %v1651_v29 = vand.u32 2147483648, %v1624_v16  ;;  %v1649_v31 = vand.u32 2147483647, %v1624_v16  ;;  %vm1645_vm9 = vweird.f32 %v1624_v16 }
 0x2f5   : > { %v1626_v19 = vmul.f32 %v1979_v17, %v1623_v11  ;;  %vm1631_vm4 = vweird.f32 %v1979_v17 }
 0x2f6   : > { %vm1632_vm6 = vmor %vm1630_vm5, %vm1631_vm4  ;;  %v1652_v33 = vor.u32 1.1754944e-38, %v1651_v29  ;;  %vm1650_vm11 = vcmp.eq.f32.partialorder %v1649_v31, 8.507059e+37 }
 0x2f7   : > { %v1627_v20 = vsub.f32 1.0, %v1626_v19 }
 0x2f9   : > { %v1628_v22 = vmul.f32 %v1979_v17, %v1627_v20 }
 0x2fa   : > { %v1981_v48 = vpop.eup %1980 }
 0x2fb   : > { %v1629_v26 = vadd.f32 %v1979_v17, %v1628_v22  ;;  %v1641_v23 = vmul.f32 %v1981_v48, %v1624_v16  ;;  %vm1646_vm8 = vweird.f32 %v1981_v48 }
 0x2fc   : > { %vm1647_vm10 = vmor %vm1645_vm9, %vm1646_vm8 }
 0x2fd   : > { %v1633_v27 = vsel %vm1632_vm6, %v1979_v17, %v1629_v26  ;;  %v1642_v28 = vsub.f32 1.0, %v1641_v23 }
 0x2fe   : > { %v1638_v54 = vsel %vm1635_vm7, %v1637_v41, %v1633_v27 }
 0x2ff   : > { %v1655_v30 = vmul.f32 %v1638_v54, %v1615_v5  ;;  %v1643_v35 = vmul.f32 %v1981_v48, %v1642_v28 }
 0x301   : > { %v1644_v32 = vadd.f32 %v1981_v48, %v1643_v35  ;;  %1657 = vst.msk [vmem:[%s222_s22] sm:$0xff] %vm232_vm0, %v1655_v30 }
 0x303   : > { %v1648_v49 = vsel %vm1647_vm10, %v1981_v48, %v1644_v32 }
 0x304   : > { %v1653_v3 = vsel %vm1650_vm11, %v1652_v33, %v1648_v49 }
 0x305   : > { %v1656_v34 = vmul.f32 %v1653_v3, %v1616_v12 }
 0x307   : > { %1658 = vst.msk [vmem:[%s222_s22 + $0x8] sm:$0xff] %vm232_vm0, %v1656_v34 }
 0x308   : > { %2054 = shalt.err (!%p2051_p1)
}
 0x309   : > { %s2126_s21 = smov 128   ;;  %s2127_s1 = smov 8  }
 0x30a   : > { %1895 = dma.vmem_to_hbm [thread:$0]  (%p2203_p8), %s1673_s17, 256, %s1675_s24, %s1660_s30, %s2126_s21, %s2126_s21, %s2127_s1  }
 0x30b PF: > { %s1689_s27 = sand.u32 1, %s2093_s14   ;;  %p1906_p2 = pnand %p1775_p13, %p2207_p9 }
 0x30c   : > { %s1690_s28 = scalar_lea.sflag [#allocation7], %s1689_s27 }
 0x30d   : > { %p1907_p4 = pneg %p1906_p2 }
 0x30f   : > { %2088 = dma.done.wait (%p1907_p4), %s1690_s28, 256  }
 0x310   : > { %2090 = vsyncadd (%p1907_p4), %s1690_s28, 4294967040  ;;  %s21_s19 = sadd.s32 1, %s2113_s19   ;;  %s2974_s14 = smov %s2097_s15 }
 0x311   : > { %p18_p6 = scmp.ge.s32.totalorder %s21_s19, 4   ;;  %s2975_s15 = smov %s2101_s16 }
 0x312   : > { %s2976_s16 = smov %s2245_s23  ;;  %s2977_s17 = smov %s2109_s18 }
 0x313   : > { %s2978_s18 = smov %s2980_s5  ;;  %20 = sbr.rel (!%p18_p6) target bundleno = 9 (0x9), region = 98 }
 0x318   :  { %1696 = vsyncpa [#allocation6], 1 }
 0x319   :  { %1698 = vsyncpa [#allocation6 + $0x1], 1 }
 0x31a   :  { %1699 = vsyncpa [#allocation7], 1 }
 0x31b   :  { %1701 = vsyncpa [#allocation7 + $0x1], 1 }
 0x31c   :  { %1702 = vsyncpa [#allocation8], 1 }
 0x31d   :  { %1704 = vsyncpa [#allocation8 + $0x1], 1 }

</bundles_post_ra>
